<compile_context>
chip_gen: v7x
topology: tpu7x:2x2x1
jax: 0.10.0
libtpu: 0.0.40
codegen_flags: <defaults>
</compile_context>

<pallas_src>
import math

import jax
import jax.numpy as jnp
from jax.experimental import pallas as pl
from jax.experimental.pallas import tpu as pltpu


# Below this many elements (or when D is not a multiple of 128) the Pallas
# kernel is pure overhead; fall back to fused XLA elementwise.
_MIN_PALLAS_ELEMENTS = 64 * 1024


def _gaussian_kernel(x_ref, noise_ref, mean_ref, std_ref, o_ref):
    # Elementwise hot path: out = x * (mean + std * noise).
    # mean/std are [1, block_d] and broadcast over the sublane (batch) axis.
    x = x_ref[...]
    n = noise_ref[...]
    mean = mean_ref[...]
    std = std_ref[...]
    o_ref[...] = (x * (mean + std * n)).astype(o_ref.dtype)


def _round_up(v, m):
    return ((v + m - 1) // m) * m


def gaussian_layer(x, noise, mean, std, *, block_b=None, block_d=None,
                   use_pallas=None):
    """Apply GaussianLayer: x * (mean + std * noise).

    x, noise: [B, D]; mean, std: [1, D].
    """
    B, D = x.shape
    assert noise.shape == (B, D)
    assert mean.shape == (1, D) and std.shape == (1, D)

    # --- Fallback path: tiny or lane-sparse problems are better left to XLA.
    if use_pallas is None:
        use_pallas = (D % 128 == 0) and (B * D >= _MIN_PALLAS_ELEMENTS)
    if not use_pallas:
        return (x * (mean + std * noise)).astype(x.dtype)

    itemsize = jnp.dtype(x.dtype).itemsize
    # Sublane packing: 8 rows for 4-byte dtypes, 16 for 2-byte, 32 for 1-byte.
    sublane = {4: 8, 2: 16, 1: 32}.get(itemsize, 8)

    # Row tile: ~512 rows (big enough to hide per-step overhead and reach
    # ~85% of HBM roofline), multiple of the sublane packing.
    if block_b is None:
        block_b = min(512, _round_up(B, sublane))
    # Lane tile: multiple of 128 (lane-dense unmasked stores), capped so the
    # VMEM footprint stays independent of D and fits every generation.
    if block_d is None:
        block_d = min(D, 1024)
    assert block_d % 128 == 0, "lane tile must be a multiple of 128"
    assert block_b % sublane == 0, "row tile must be a multiple of sublane pack"

    num_b = pl.cdiv(B, block_b)
    num_d = pl.cdiv(D, block_d)

    # VMEM budget: 3 streams (x, noise, out) double-buffered + 2 param slabs,
    # with ~50% headroom. e.g. 512x1024 f32 -> ~12 MiB, fits v5e's 16 MiB
    # scoped default and is far under v7x's 64 MiB physical VMEM.
    tile_bytes = block_b * block_d * itemsize
    param_bytes = block_d * jnp.dtype(mean.dtype).itemsize
    vmem_needed = 2 * (3 * tile_bytes + 2 * param_bytes)
    vmem_limit = min(int(vmem_needed * 1.5) + (1 << 20), 100 << 20)

    # Grid: D tiles outer, B tiles inner -> the [1, block_d] param block index
    # changes as rarely as possible (only when the column stripe advances).
    grid = (num_d, num_b)

    return pl.pallas_call(
        _gaussian_kernel,
        out_shape=jax.ShapeDtypeStruct((B, D), x.dtype),
        grid_spec=pltpu.PrefetchScalarGridSpec(
            num_scalar_prefetch=0,
            grid=grid,
            in_specs=[
                pl.BlockSpec((block_b, block_d), lambda j, i: (i, j)),  # x
                pl.BlockSpec((block_b, block_d), lambda j, i: (i, j)),  # noise
                pl.BlockSpec((1, block_d), lambda j, i: (0, j)),        # mean
                pl.BlockSpec((1, block_d), lambda j, i: (0, j)),        # std
            ],
            out_specs=pl.BlockSpec((block_b, block_d), lambda j, i: (i, j)),
        ),
        compiler_params=pltpu.CompilerParams(
            dimension_semantics=("parallel", "parallel"),
            vmem_limit_bytes=vmem_limit,
        ),
    )(x, noise, mean, std)


def init_params(input_dim, dtype=jnp.float32, seed=0):
    """Deterministic parameter init mirroring the PyTorch module.

    std  : xavier_uniform_ on a [1, input_dim] tensor
           -> uniform(-a, a), a = sqrt(6 / (input_dim + 1))
    mean : zeros
    """
    key = jax.random.PRNGKey(seed)
    bound = math.sqrt(6.0 / (input_dim + 1))
    std = jax.random.uniform(
        key, (1, input_dim), dtype=dtype, minval=-bound, maxval=bound
    )
    mean = jnp.zeros((1, input_dim), dtype=dtype)
    return mean, std


if __name__ == "__main__":
    key = jax.random.PRNGKey(0)
    kx, kn = jax.random.split(key)

    # --- Case 1: tiny shape typical of the module's usage (B=8, D=32).
    # Too small / lane-sparse for a custom kernel -> fused-XLA fallback path.
    B, D = 8, 32
    x = jax.random.normal(kx, (B, D), dtype=jnp.float32)
    noise = jax.random.normal(kn, (B, D), dtype=jnp.float32)
    mean, std = init_params(D, seed=0)
    out = jax.block_until_ready(gaussian_layer(x, noise, mean, std))
    ref = x * (mean + std * noise)
    assert out.shape == (B, D)
    assert jnp.allclose(out, ref, atol=1e-6, rtol=1e-6)

    # --- Case 2: lane-dense shape that exercises the Pallas kernel
    # (2 row tiles x 1 lane tile -> pipelined grid, megacore-shardable).
    B2, D2 = 1024, 256
    x2 = jax.random.normal(kx, (B2, D2), dtype=jnp.float32)
    noise2 = jax.random.normal(kn, (B2, D2), dtype=jnp.float32)
    mean2, std2 = init_params(D2, seed=1)
    out2 = jax.block_until_ready(
        gaussian_layer(x2, noise2, mean2, std2, use_pallas=True)
    )
    ref2 = x2 * (mean2 + std2 * noise2)
    assert out2.shape == (B2, D2)
    assert jnp.allclose(out2, ref2, atol=1e-6, rtol=1e-6)

    print("KERNEL_OK")
</pallas_src>

<mosaic_0001>
module attributes {stable_mosaic.version = 11 : i64} {
  func.func @_gaussian_kernel(%arg0: i32, %arg1: i32, %arg2: memref<512x256xf32, #tpu.memory_space<vmem>>, %arg3: memref<512x256xf32, #tpu.memory_space<vmem>>, %arg4: memref<1x256xf32, #tpu.memory_space<vmem>>, %arg5: memref<1x256xf32, #tpu.memory_space<vmem>>, %arg6: memref<512x256xf32, #tpu.memory_space<vmem>>) attributes {dimension_semantics = [#tpu.dimension_semantics<parallel>, #tpu.dimension_semantics<parallel>], iteration_bounds = array<i64: 1, 2>, scalar_prefetch = 0 : i64, scratch_operands = 0 : i64, tpu.core_type = #tpu.core_type<tc>, window_params = [{transform_indices = @transform_0, window_bounds = array<i64: 512, 256>}, {transform_indices = @transform_1, window_bounds = array<i64: 512, 256>}, {transform_indices = @transform_2, window_bounds = array<i64: 1, 256>}, {transform_indices = @transform_3, window_bounds = array<i64: 1, 256>}, {transform_indices = @transform_4, window_bounds = array<i64: 512, 256>}]} {
    %c0 = arith.constant 0 : index
    %c0_0 = arith.constant 0 : index
    %0 = vector.load %arg2[%c0, %c0_0] : memref<512x256xf32, #tpu.memory_space<vmem>>, vector<512x256xf32>
    %c0_1 = arith.constant 0 : index
    %c0_2 = arith.constant 0 : index
    %1 = vector.load %arg3[%c0_1, %c0_2] : memref<512x256xf32, #tpu.memory_space<vmem>>, vector<512x256xf32>
    %c0_3 = arith.constant 0 : index
    %c0_4 = arith.constant 0 : index
    %2 = vector.load %arg4[%c0_3, %c0_4] : memref<1x256xf32, #tpu.memory_space<vmem>>, vector<1x256xf32>
    %c0_5 = arith.constant 0 : index
    %c0_6 = arith.constant 0 : index
    %3 = vector.load %arg5[%c0_5, %c0_6] : memref<1x256xf32, #tpu.memory_space<vmem>>, vector<1x256xf32>
    %4 = vector.broadcast %3 : vector<1x256xf32> to vector<512x256xf32>
    %5 = arith.mulf %4, %1 : vector<512x256xf32>
    %6 = vector.broadcast %2 : vector<1x256xf32> to vector<512x256xf32>
    %7 = arith.addf %6, %5 : vector<512x256xf32>
    %8 = arith.mulf %0, %7 : vector<512x256xf32>
    %c0_7 = arith.constant 0 : index
    %c0_8 = arith.constant 0 : index
    %9 = vector.load %arg6[%c0_7, %c0_8] : memref<512x256xf32, #tpu.memory_space<vmem>>, vector<512x256xf32>
    tpu.vector_store %arg6[%c0_7, %c0_8], %8 {strides = array<i32>} : memref<512x256xf32, #tpu.memory_space<vmem>>, vector<512x256xf32>,
    return
  }
  func.func @transform_0(%arg0: i32, %arg1: i32) -> (i32, i32) {
    %c0_i32 = arith.constant 0 : i32
    return %arg1, %arg0 : i32, i32
  }
  func.func @transform_1(%arg0: i32, %arg1: i32) -> (i32, i32) {
    %c0_i32 = arith.constant 0 : i32
    return %arg1, %arg0 : i32, i32
  }
  func.func @transform_2(%arg0: i32, %arg1: i32) -> (i32, i32) {
    %c0_i32 = arith.constant 0 : i32
    %c0_i32_0 = arith.constant 0 : i32
    return %c0_i32, %arg0 : i32, i32
  }
  func.func @transform_3(%arg0: i32, %arg1: i32) -> (i32, i32) {
    %c0_i32 = arith.constant 0 : i32
    %c0_i32_0 = arith.constant 0 : i32
    return %c0_i32, %arg0 : i32, i32
  }
  func.func @transform_4(%arg0: i32, %arg1: i32) -> (i32, i32) {
    %c0_i32 = arith.constant 0 : i32
    return %arg1, %arg0 : i32, i32
  }
}

</mosaic_0001>

<bundles_post_ra>
// kernel: tpu_custom_call.1
= control target key start
LH: loop header
LB: loop body
LE: loop exit
PB: predicated region body
PF: predicated region fallthrough
CT: control target
= control target key end

     0   :  { %9 = vsyncpa [#allocation3], 0  ;;  %s2453_s0 = inlined_call_operand.hbm [shape: f32[1024,256], index: 0, kind: input, shape index: {}]   ;;  %s2454_s1 = inlined_call_operand.hbm [shape: f32[1024,256], index: 1, kind: input, shape index: {}]   ;;  %s2455_s2 = inlined_call_operand.vmem [shape: f32[1,256], index: 2, kind: input, shape index: {}]   ;;  %s2456_s3 = inlined_call_operand.vmem [shape: f32[1,256], index: 3, kind: input, shape index: {}]   ;;  %s2457_s4 = inlined_call_operand.hbm [shape: f32[1024,256], index: 4, kind: output, shape index: {}]  }
   0x1   :  { %11 = vsyncpa [#allocation3 + $0x1], 0 }
   0x2   :  { %12 = vsyncpa [#allocation6], 0 }
   0x3   :  { %14 = vsyncpa [#allocation6 + $0x1], 0 }
   0x4   :  { %15 = vsyncpa [#allocation4], 0 }
   0x5   :  { %17 = vsyncpa [#allocation4 + $0x1], 0  ;;  %s1551_s15 = smov 0   ;;  %s1553_s16 = smov 0  }
   0x6   :  { %s1555_s17 = smov 0   ;;  %s1557_s18 = smov 0  }
   0x7   :  { %s1559_s19 = smov 0   ;;  %s1561_s20 = smov 0  }
   0x8 LB: > { %s1270_s21 = sadd.s32 4294967295, %s1517_s20   ;;  %s1271_s22 = sadd.s32 4294967294, %s1517_s20   ;;  %s1517_s20 = sphi %s1561_s20, %s23_s20   ;;  %s1513_s19 = sphi %s1559_s19, %s2477_s19   ;;  %s1509_s18 = sphi %s1557_s18, %s2476_s18   ;;  %s1505_s17 = sphi %s1555_s17, %s2475_s17   ;;  %s1501_s16 = sphi %s1553_s16, %s2474_s16   ;;  %s1497_s15 = sphi %s1551_s15, %s2473_s15  }
   0x9   : > { %s32_s23 = sadd.s32 1, %s1513_s19  ;;  %s44_s24 = sadd.s32 1, %s1505_s17 }
   0xa   : > { %p33_p0 = scmp.ge.s32.totalorder %s32_s23, 2  ;;  %p51_p1 = scmp.ne.s32.totalorder %s1505_s17, %s1501_s16 }
   0xb   : > { %p52_p2 = scmp.eq.s32.totalorder %s1517_s20, 0  ;;  %p57_p3 = scmp.ne.s32.totalorder %s1501_s16, %s1497_s15 }
   0xc   : > { %s2479_s23 = smov (%p33_p0, %s32_s23), 0  ;;  %p58_p5 = scmp.eq.s32.totalorder %s1270_s21, 0 }
   0xd   : > { %p1592_p4 = por %p52_p2, %p51_p1  ;;  %s39_s26 = ssub.s32 %s1513_s19, %s2479_s23 }
   0xe   : > { %p163_p6 = scmp.eq.s32.totalorder %s1270_s21, 1  ;;  %p42_p7 = scmp.eq.s32.totalorder %s39_s26, 0 }
   0xf   : > { %p1598_p8 = por %p58_p5, %p57_p3  ;;  %p169_p10 = scmp.eq.s32.totalorder %s1271_s22, 1 }
  0x10   : > { %p1602_p9 = por %p163_p6, %p51_p1  ;;  %p1317_p13 = scmp.lt.s32.totalorder %s1517_s20, 2 }
  0x11   : > { %s2462_s27 = scalar_select %p1598_p8, 1, 0 }
  0x12   : > { %s2463_s28 = scalar_select %p1602_p9, 1, 0 }
  0x13   : > { %s1607_s29 = scalar_select %p42_p7, %s1505_s17, %s44_s24  }
  0x14   : > { %p1609_p11 = por %p169_p10, %p57_p3  ;;  %s1616_s5 = sand.u32 1, %s1505_s17  }
  0x15   : > { %s1276_s6 = sshll.u32 %s1616_s5, 10  ;;  %s1295_s7 = sshll.u32 %s1513_s19, 14 }
  0x16   : > { %s2464_s30 = scalar_select %p1609_p11, 1, 0 }
  0x17   : > { %s1625_s10 = scalar_lea.hbm %s2453_s0, %s1295_s7  ;;  %s209_s11 = scalar_lea.vmem [#allocation2], %s1276_s6 }
  0x18   : > { %s219_s12 = sshll.u32 %s209_s11, 4  ;;  %p1633_p0 = pnand %p1317_p13, %p1592_p4  ;;  %s1629_s12 = int_to_ptr.vmem [resolvable:$true] %s219_s12 }
  0x19   : > { %s206_s14 = scalar_lea.sflag [#allocation3], %s1616_s5  ;;  %s1371_s21 = scalar_lea.hbm %s1625_s10, 16384 }
  0x1a   : > { %p1372_p2 = scmp.ne.s32.totalorder %s1625_s10, %s1371_s21  ;;  %p1373_p3 = pneg %p1633_p0 }
  0x1b   : > { %s1376_s25 = scalar_lea.hbm %s2453_s0, 32768  ;;  %p1377_p4 = scmp.lt.u32.totalorder %s1625_s10, %s2453_s0 }
  0x1c   : > { %p1374_p5 = pnand %p1373_p3, %p1372_p2  ;;  %p1378_p7 = scmp.lt.u32.totalorder %s1376_s25, %s1371_s21 }
  0x1d   : > { %p1380_p13 = scmp.lt.u32.totalorder %s1371_s21, %s1625_s10 }
  0x1e   : > { %p1375_p6 = pneg %p1374_p5  ;;  %p1379_p10 = por %p1378_p7, %p1377_p4 }
  0x20   : > { %p1381_p12 = por %p1380_p13, %p1379_p10 }
  0x22   : > { %p1382_p1 = pnand %p1381_p12, %p1375_p6 }
  0x24   : > { %1385 = shalt.err (!%p1382_p1)
}
  0x25   : > { %s1386_s9 = scalar_lea.vmem %s1629_s12, 16384  ;;  %s1519_s11 = smov [#allocation2]  }
  0x26   : > { %p1387_p2 = scmp.ne.s32.totalorder %s1629_s12, %s1386_s9  ;;  %s1391_s22 = sshll.u32 %s1519_s11, 4  ;;  %s1392_s22 = int_to_ptr.vmem [resolvable:$false] %s1391_s22 }
  0x27   : > { %s1393_s24 = scalar_lea.vmem %s1392_s22, 32768  ;;  %p1394_p9 = scmp.lt.s32.totalorder %s1629_s12, %s1392_s22 }
  0x28   : > { %p1389_p5 = pnand %p1387_p2, %p1373_p3  ;;  %p1395_p4 = scmp.lt.s32.totalorder %s1393_s24, %s1386_s9 }
  0x2a   : > { %p1390_p11 = pneg %p1389_p5  ;;  %p1396_p7 = por %p1395_p4, %p1394_p9 }
  0x2c   : > { %p1397_p10 = pnand %p1396_p7, %p1390_p11 }
  0x2e   : > { %1400 = shalt.err (!%p1397_p10)
}
  0x2f   : > { %s2459_s21 = smov 256   ;;  %s1521_s25 = smov 16  }
  0x30   : > { %1309 = dma.hbm_to_vmem [thread:$0]  (!%p1633_p0), %s1625_s10, 16384, %s1629_s12, %s206_s14, %s2459_s21, %s2459_s21, %s1521_s25  }
  0x31   : > { %p251_p9 = scmp.lt.s32.totalorder %s1517_s20, 3  ;;  %s1675_s9 = scalar_lea.hbm %s2454_s1, %s1295_s7 }
  0x32   : > { %p2466_p11 = scmp.ge.s32.totalorder %s1517_s20, 1  ;;  %s233_s22 = scalar_lea.vmem [#allocation5], %s1276_s6 }
  0x33   : > { %s243_s24 = sshll.u32 %s233_s22, 4  ;;  %s230_s10 = scalar_lea.sflag [#allocation6], %s1616_s5  ;;  %s1685_s24 = int_to_ptr.vmem [resolvable:$true] %s243_s24 }
  0x34   : > { %p1679_p12 = pnand %p2466_p11, %p251_p9  ;;  %s1401_s12 = scalar_lea.hbm %s1675_s9, 16384 }
  0x35   : > { %p1402_p1 = scmp.ne.s32.totalorder %s1675_s9, %s1401_s12  ;;  %s1406_s26 = scalar_lea.hbm %s2454_s1, 32768 }
  0x36   : > { %p1407_p2 = scmp.lt.u32.totalorder %s1675_s9, %s2454_s1  ;;  %p1408_p5 = scmp.lt.u32.totalorder %s1406_s26, %s1401_s12 }
  0x37   : > { %p1404_p6 = pnand %p1402_p1, %p1373_p3  ;;  %p1410_p7 = scmp.lt.u32.totalorder %s1401_s12, %s1675_s9 }
  0x38   : > { %p1409_p4 = por %p1408_p5, %p1407_p2 }
  0x39   : > { %p1405_p13 = pneg %p1404_p6 }
  0x3a   : > { %p1411_p10 = por %p1410_p7, %p1409_p4 }
  0x3c   : > { %p1412_p9 = pnand %p1411_p10, %p1405_p13 }
  0x3e   : > { %1415 = shalt.err (!%p1412_p9)
}
  0x3f   : > { %s1416_s6 = scalar_lea.vmem %s1685_s24, 16384  ;;  %s1522_s22 = smov [#allocation5]  }
  0x40   : > { %p1417_p11 = scmp.ne.s32.totalorder %s1685_s24, %s1416_s6  ;;  %s1421_s7 = sshll.u32 %s1522_s22, 4  ;;  %s1422_s7 = int_to_ptr.vmem [resolvable:$false] %s1421_s7 }
  0x41   : > { %s1423_s21 = scalar_lea.vmem %s1422_s7, 32768  ;;  %p1424_p8 = scmp.lt.s32.totalorder %s1685_s24, %s1422_s7 }
  0x42   : > { %p1419_p1 = pnand %p1417_p11, %p1373_p3  ;;  %p1425_p2 = scmp.lt.s32.totalorder %s1423_s21, %s1416_s6 }
  0x44   : > { %p1420_p6 = pneg %p1419_p1  ;;  %p1426_p5 = por %p1425_p2, %p1424_p8 }
  0x46   : > { %p1427_p4 = pnand %p1426_p5, %p1420_p6 }
  0x48   : > { %1430 = shalt.err (!%p1427_p4)
}
  0x49   : > { %s2468_s12 = smov 256   ;;  %255 = sbr.rel (%p1679_p12) target bundleno = 220 (0xdc), region = 36 }
  0x4a   : > { %1312 = dma.hbm_to_vmem [thread:$0]  (!%p1633_p0), %s1675_s9, 16384, %s1685_s24, %s230_s10, %s2468_s12, %s2468_s12, %s1521_s25  }
  0x4b   : > { %s1719_s14 = sand.u32 (!%p1679_p12), 1, %s1501_s16   ;;  %p2469_p8 = scmp.ne.s32.totalorder (!%p1679_p12), %s2462_s27, 0 }
  0x4c   : > { %s1722_s26 = sshll.u32 (!%p1679_p12), %s1719_s14, 10  ;;  %s258_s13 = scalar_lea.sflag (!%p1679_p12), [#allocation3], %s1719_s14 }
  0x4d   : > { %s1726_s8 = scalar_lea.vmem (!%p1679_p12), [#allocation2], %s1722_s26 }
  0x50   : > { %1484 = dma.done.wait (%p2469_p8), %s258_s13, 16384  }
  0x51   : > { %1486 = vsyncadd (%p2469_p8), %s258_s13, 4294950912  ;;  %s267_s5 = scalar_lea.sflag [#allocation6], %s1719_s14  ;;  %s1734_s25 = scalar_lea.vmem [#allocation5], %s1722_s26 }
  0x52   : > { %1488 = dma.done.wait (%p2469_p8), %s267_s5, 16384  }
  0x53   : > { %1490 = vsyncadd (%p2469_p8), %s267_s5, 4294950912  ;;  %v583_v0 = vlaneseq  ;;  %v580_v4 = vld [vmem:[%s2455_s2] sm:$0x3]  ;;  %v453_v7 = vld [vmem:[%s1734_s25 + $0x8] sm:$0xff]  ;;  %s1793_s10 = scalar_lea.vmem [#allocation7], %s1722_s26  ;;  %s1299_s6 = sshll.u32 %s1509_s18, 14 }
  0x54   : > { %v452_v5 = vld [vmem:[%s1734_s25] sm:$0xff]  ;;  %v454_v12 = vld [vmem:[%s1734_s25 + $0x10] sm:$0xff]  ;;  %v455_v14 = vld [vmem:[%s1734_s25 + $0x18] sm:$0xff]  ;;  %s1133_s22 = sshll.u32 %s1793_s10, 4  ;;  %s2398_s21 = scalar_lea.hbm %s2457_s4, %s1299_s6  ;;  %s2400_s22 = int_to_ptr.vmem [resolvable:$true] %s1133_s22 }
  0x55   : > { %v584_v1 = vshrl.u32 %v583_v0, 7  ;;  %v581_v6 = vld [vmem:[%s2456_s3] sm:$0x3]  ;;  %v325_v17 = vld [vmem:[%s1726_s8 + $0x8] sm:$0xff]  ;;  %v326_v19 = vld [vmem:[%s1726_s8 + $0x10] sm:$0xff]  ;;  %s1117_s12 = scalar_lea.sflag [#allocation4], %s1719_s14 }
  0x56   : > { %v324_v13 = vld [vmem:[%s1726_s8] sm:$0xff]  ;;  %v457_v22 = vld [vmem:[%s1734_s25 + $0x28] sm:$0xff]  ;;  %v327_v23 = vld [vmem:[%s1726_s8 + $0x18] sm:$0xff]  ;;  %s1431_s26 = scalar_lea.vmem %s2400_s22, 16384  ;;  %p2470_p3 = scmp.ne.s32.totalorder %s2463_s28, 0 }
  0x57   : > { %v585_v2 = vsub.s32 0, %v584_v1  ;;  %v589_v3 = vsub.s32 1, %v584_v1  ;;  %v456_v15 = vld [vmem:[%s1734_s25 + $0x20] sm:$0xff]  ;;  %v458_v26 = vld [vmem:[%s1734_s25 + $0x30] sm:$0xff]  ;;  %v459_v27 = vld [vmem:[%s1734_s25 + $0x38] sm:$0xff]  ;;  %p1432_p0 = scmp.ne.s32.totalorder %s2400_s22, %s1431_s26  ;;  %s1523_s13 = smov [#allocation7]  }
  0x58   : > { %v328_v32 = vld [vmem:[%s1726_s8 + $0x20] sm:$0xff]  ;;  %v329_v33 = vld [vmem:[%s1726_s8 + $0x28] sm:$0xff]  ;;  %v462_v40 = vld [vmem:[%s1734_s25 + $0x50] sm:$0xff] }
  0x59   : > { %v1748_v8 = vrot.slane %v581_v6, %v585_v2  ;;  %v1750_v9 = vrot.slane %v580_v4, %v585_v2  ;;  %v1752_v10 = vrot.slane %v581_v6, %v589_v3  ;;  %v1754_v11 = vrot.slane %v580_v4, %v589_v3  ;;  %v460_v38 = vld [vmem:[%s1734_s25 + $0x40] sm:$0xff]  ;;  %v461_v39 = vld [vmem:[%s1734_s25 + $0x48] sm:$0xff]  ;;  %v330_v45 = vld [vmem:[%s1726_s8 + $0x30] sm:$0xff]  ;;  %p1433_p12 = pnand %p1432_p0, %p2470_p3 }
  0x5a   : > { %v331_v46 = vld [vmem:[%s1726_s8 + $0x38] sm:$0xff]  ;;  %v464_v52 = vld [vmem:[%s1734_s25 + $0x60] sm:$0xff]  ;;  %v465_v53 = vld [vmem:[%s1734_s25 + $0x68] sm:$0xff] }
  0x5b   : > { %v593_v16 = vmul.f32 %v1748_v8, %v452_v5  ;;  %v594_v18 = vmul.f32 %v1752_v10, %v453_v7  ;;  %v595_v20 = vmul.f32 %v1748_v8, %v454_v12  ;;  %v596_v21 = vmul.f32 %v1752_v10, %v455_v14  ;;  %v463_v47 = vld [vmem:[%s1734_s25 + $0x58] sm:$0xff]  ;;  %v332_v54 = vld [vmem:[%s1726_s8 + $0x40] sm:$0xff]  ;;  %v333_v56 = vld [vmem:[%s1726_s8 + $0x48] sm:$0xff]  ;;  %p1434_p13 = pneg %p1433_p12 }
  0x5c   : > { %v597_v24 = vmul.f32 %v1748_v8, %v456_v15  ;;  %v598_v25 = vmul.f32 %v1752_v10, %v457_v22  ;;  %v599_v36 = vmul.f32 %v1748_v8, %v458_v26  ;;  %v600_v37 = vmul.f32 %v1752_v10, %v459_v27  ;;  %v466_v60 = vld [vmem:[%s1734_s25 + $0x70] sm:$0xff]  ;;  %v335_v0 = vld [vmem:[%s1726_s8 + $0x58] sm:$0xff]  ;;  %v336_v12 = vld [vmem:[%s1726_s8 + $0x60] sm:$0xff] }
  0x5d   : > { %v732_v28 = vadd.f32 %v1750_v9, %v593_v16  ;;  %v733_v29 = vadd.f32 %v1754_v11, %v594_v18  ;;  %v734_v30 = vadd.f32 %v1750_v9, %v595_v20  ;;  %v735_v31 = vadd.f32 %v1754_v11, %v596_v21  ;;  %v334_v63 = vld [vmem:[%s1726_s8 + $0x50] sm:$0xff]  ;;  %v467_v3 = vld [vmem:[%s1734_s25 + $0x78] sm:$0xff]  ;;  %v468_v14 = vld [vmem:[%s1734_s25 + $0x80] sm:$0xff] }
  0x5e   : > { %v736_v34 = vadd.f32 %v1750_v9, %v597_v24  ;;  %v737_v35 = vadd.f32 %v1754_v11, %v598_v25  ;;  %v738_v50 = vadd.f32 %v1750_v9, %v599_v36  ;;  %v739_v51 = vadd.f32 %v1754_v11, %v600_v37  ;;  %v470_v20 = vld [vmem:[%s1734_s25 + $0x90] sm:$0xff]  ;;  %v471_v21 = vld [vmem:[%s1734_s25 + $0x98] sm:$0xff]  ;;  %v341_v36 = vld [vmem:[%s1726_s8 + $0x88] sm:$0xff] }
  0x5f   : > { %v860_v41 = vmul.f32 %v732_v28, %v324_v13  ;;  %v861_v42 = vmul.f32 %v733_v29, %v325_v17  ;;  %v862_v43 = vmul.f32 %v734_v30, %v326_v19  ;;  %v863_v44 = vmul.f32 %v735_v31, %v327_v23  ;;  %v337_v13 = vld [vmem:[%s1726_s8 + $0x68] sm:$0xff]  ;;  %v338_v26 = vld [vmem:[%s1726_s8 + $0x70] sm:$0xff]  ;;  %v339_v27 = vld [vmem:[%s1726_s8 + $0x78] sm:$0xff] }
  0x60   : > { %v864_v48 = vmul.f32 %v736_v34, %v328_v32  ;;  %v865_v49 = vmul.f32 %v737_v35, %v329_v33  ;;  %v601_v55 = vmul.f32 %v1748_v8, %v460_v38  ;;  %v602_v57 = vmul.f32 %v1752_v10, %v461_v39  ;;  %v469_v19 = vld [vmem:[%s1734_s25 + $0x88] sm:$0xff]  ;;  %v472_v28 = vld [vmem:[%s1734_s25 + $0xa0] sm:$0xff] }
  0x61   : > { %988 = vst [vmem:[%s1793_s10] sm:$0xff] %v860_v41  ;;  %989 = vst [vmem:[%s1793_s10 + $0x8] sm:$0xff] %v861_v42  ;;  %v603_v58 = vmul.f32 %v1748_v8, %v462_v40  ;;  %v604_v59 = vmul.f32 %v1752_v10, %v463_v47  ;;  %v866_v61 = vmul.f32 %v738_v50, %v330_v45  ;;  %v340_v33 = vld [vmem:[%s1726_s8 + $0x80] sm:$0xff]  ;;  %v473_v34 = vld [vmem:[%s1734_s25 + $0xa8] sm:$0xff] }
  0x62   : > { %990 = vst [vmem:[%s1793_s10 + $0x10] sm:$0xff] %v862_v43  ;;  %991 = vst [vmem:[%s1793_s10 + $0x18] sm:$0xff] %v863_v44  ;;  %v867_v62 = vmul.f32 %v739_v51, %v331_v46  ;;  %v605_v1 = vmul.f32 %v1748_v8, %v464_v52  ;;  %v606_v2 = vmul.f32 %v1752_v10, %v465_v53  ;;  %v474_v40 = vld [vmem:[%s1734_s25 + $0xb0] sm:$0xff]  ;;  %v475_v41 = vld [vmem:[%s1734_s25 + $0xb8] sm:$0xff] }
  0x63   : > { %992 = vst [vmem:[%s1793_s10 + $0x20] sm:$0xff] %v864_v48  ;;  %993 = vst [vmem:[%s1793_s10 + $0x28] sm:$0xff] %v865_v49  ;;  %v740_v4 = vadd.f32 %v1750_v9, %v601_v55  ;;  %v741_v5 = vadd.f32 %v1754_v11, %v602_v57  ;;  %v742_v6 = vadd.f32 %v1750_v9, %v603_v58  ;;  %v342_v44 = vld [vmem:[%s1726_s8 + $0x90] sm:$0xff]  ;;  %v343_v45 = vld [vmem:[%s1726_s8 + $0x98] sm:$0xff] }
  0x64   : > { %v743_v7 = vadd.f32 %v1754_v11, %v604_v59  ;;  %994 = vst [vmem:[%s1793_s10 + $0x30] sm:$0xff] %v866_v61  ;;  %995 = vst [vmem:[%s1793_s10 + $0x38] sm:$0xff] %v867_v62  ;;  %v744_v15 = vadd.f32 %v1750_v9, %v605_v1  ;;  %v745_v16 = vadd.f32 %v1754_v11, %v606_v2  ;;  %v344_v46 = vld [vmem:[%s1726_s8 + $0xa0] sm:$0xff]  ;;  %v345_v53 = vld [vmem:[%s1726_s8 + $0xa8] sm:$0xff] }
  0x65   : > { %v607_v17 = vmul.f32 %v1748_v8, %v466_v60  ;;  %v608_v18 = vmul.f32 %v1752_v10, %v467_v3  ;;  %v868_v22 = vmul.f32 %v740_v4, %v332_v54  ;;  %v869_v23 = vmul.f32 %v741_v5, %v333_v56  ;;  %v346_v54 = vld [vmem:[%s1726_s8 + $0xb0] sm:$0xff]  ;;  %v476_v55 = vld [vmem:[%s1734_s25 + $0xc0] sm:$0xff]  ;;  %v477_v60 = vld [vmem:[%s1734_s25 + $0xc8] sm:$0xff] }
  0x66   : > { %v870_v24 = vmul.f32 %v742_v6, %v334_v63  ;;  %v871_v25 = vmul.f32 %v743_v7, %v335_v0  ;;  %v872_v29 = vmul.f32 %v744_v15, %v336_v12  ;;  %v873_v30 = vmul.f32 %v745_v16, %v337_v13  ;;  %v478_v61 = vld [vmem:[%s1734_s25 + $0xd0] sm:$0xff]  ;;  %v479_v62 = vld [vmem:[%s1734_s25 + $0xd8] sm:$0xff]  ;;  %v480_v4 = vld [vmem:[%s1734_s25 + $0xe0] sm:$0xff] }
  0x67   : > { %v746_v31 = vadd.f32 %v1750_v9, %v607_v17  ;;  %v747_v32 = vadd.f32 %v1754_v11, %v608_v18  ;;  %996 = vst [vmem:[%s1793_s10 + $0x40] sm:$0xff] %v868_v22  ;;  %997 = vst [vmem:[%s1793_s10 + $0x48] sm:$0xff] %v869_v23  ;;  %v609_v35 = vmul.f32 %v1748_v8, %v468_v14  ;;  %v347_v3 = vld [vmem:[%s1726_s8 + $0xb8] sm:$0xff]  ;;  %v481_v5 = vld [vmem:[%s1734_s25 + $0xe8] sm:$0xff] }
  0x68   : > { %998 = vst [vmem:[%s1793_s10 + $0x50] sm:$0xff] %v870_v24  ;;  %999 = vst [vmem:[%s1793_s10 + $0x58] sm:$0xff] %v871_v25  ;;  %v610_v37 = vmul.f32 %v1752_v10, %v469_v19  ;;  %v611_v38 = vmul.f32 %v1748_v8, %v470_v20  ;;  %v612_v39 = vmul.f32 %v1752_v10, %v471_v21  ;;  %v348_v14 = vld [vmem:[%s1726_s8 + $0xc0] sm:$0xff]  ;;  %v349_v16 = vld [vmem:[%s1726_s8 + $0xc8] sm:$0xff] }
  0x69   : > { %1000 = vst [vmem:[%s1793_s10 + $0x60] sm:$0xff] %v872_v29  ;;  %1001 = vst [vmem:[%s1793_s10 + $0x68] sm:$0xff] %v873_v30  ;;  %v874_v42 = vmul.f32 %v746_v31, %v338_v26  ;;  %v875_v43 = vmul.f32 %v747_v32, %v339_v27  ;;  %v613_v47 = vmul.f32 %v1748_v8, %v472_v28  ;;  %v482_v20 = vld [vmem:[%s1734_s25 + $0xf0] sm:$0xff]  ;;  %v483_v21 = vld [vmem:[%s1734_s25 + $0xf8] sm:$0xff] }
  0x6a   : > { %v614_v48 = vmul.f32 %v1752_v10, %v473_v34  ;;  %v748_v49 = vadd.f32 %v1750_v9, %v609_v35  ;;  %v749_v50 = vadd.f32 %v1754_v11, %v610_v37  ;;  %v750_v51 = vadd.f32 %v1750_v9, %v611_v38  ;;  %v350_v24 = vld [vmem:[%s1726_s8 + $0xd0] sm:$0xff]  ;;  %v351_v25 = vld [vmem:[%s1726_s8 + $0xd8] sm:$0xff]  ;;  %v352_v26 = vld [vmem:[%s1726_s8 + $0xe0] sm:$0xff] }
  0x6b   : > { %v751_v52 = vadd.f32 %v1754_v11, %v612_v39  ;;  %1002 = vst [vmem:[%s1793_s10 + $0x70] sm:$0xff] %v874_v42  ;;  %1003 = vst [vmem:[%s1793_s10 + $0x78] sm:$0xff] %v875_v43  ;;  %v752_v56 = vadd.f32 %v1750_v9, %v613_v47  ;;  %v615_v58 = vmul.f32 %v1748_v8, %v474_v40  ;;  %v354_v34 = vld [vmem:[%s1726_s8 + $0xf0] sm:$0xff]  ;;  %v484_v35 = vld [vmem:[%s1734_s25 + $0x100] sm:$0xff] }
  0x6c   : > { %v753_v57 = vadd.f32 %v1754_v11, %v614_v48  ;;  %v616_v59 = vmul.f32 %v1752_v10, %v475_v41  ;;  %v876_v63 = vmul.f32 %v748_v49, %v340_v33  ;;  %v877_v0 = vmul.f32 %v749_v50, %v341_v36  ;;  %v353_v33 = vld [vmem:[%s1726_s8 + $0xe8] sm:$0xff]  ;;  %v486_v41 = vld [vmem:[%s1734_s25 + $0x110] sm:$0xff]  ;;  %v487_v42 = vld [vmem:[%s1734_s25 + $0x118] sm:$0xff] }
  0x6d   : > { %v878_v1 = vmul.f32 %v750_v51, %v342_v44  ;;  %v879_v2 = vmul.f32 %v751_v52, %v343_v45  ;;  %v880_v6 = vmul.f32 %v752_v56, %v344_v46  ;;  %v754_v12 = vadd.f32 %v1750_v9, %v615_v58  ;;  %v485_v40 = vld [vmem:[%s1734_s25 + $0x108] sm:$0xff]  ;;  %v355_v47 = vld [vmem:[%s1726_s8 + $0xf8] sm:$0xff]  ;;  %v488_v48 = vld [vmem:[%s1734_s25 + $0x120] sm:$0xff] }
  0x6e   : > { %v881_v7 = vmul.f32 %v753_v57, %v345_v53  ;;  %v755_v13 = vadd.f32 %v1754_v11, %v616_v59  ;;  %1004 = vst [vmem:[%s1793_s10 + $0x80] sm:$0xff] %v876_v63  ;;  %1005 = vst [vmem:[%s1793_s10 + $0x88] sm:$0xff] %v877_v0  ;;  %v617_v15 = vmul.f32 %v1748_v8, %v476_v55  ;;  %v489_v49 = vld [vmem:[%s1734_s25 + $0x128] sm:$0xff]  ;;  %v358_v0 = vld [vmem:[%s1726_s8 + $0x110] sm:$0xff] }
  0x6f   : > { %1006 = vst [vmem:[%s1793_s10 + $0x90] sm:$0xff] %v878_v1  ;;  %1007 = vst [vmem:[%s1793_s10 + $0x98] sm:$0xff] %v879_v2  ;;  %v618_v17 = vmul.f32 %v1752_v10, %v477_v60  ;;  %v619_v18 = vmul.f32 %v1748_v8, %v478_v61  ;;  %v620_v19 = vmul.f32 %v1752_v10, %v479_v62  ;;  %v357_v56 = vld [vmem:[%s1726_s8 + $0x108] sm:$0xff]  ;;  %v490_v60 = vld [vmem:[%s1734_s25 + $0x130] sm:$0xff] }
  0x70   : > { %1008 = vst [vmem:[%s1793_s10 + $0xa0] sm:$0xff] %v880_v6  ;;  %1009 = vst [vmem:[%s1793_s10 + $0xa8] sm:$0xff] %v881_v7  ;;  %v882_v22 = vmul.f32 %v754_v12, %v346_v54  ;;  %v883_v23 = vmul.f32 %v755_v13, %v347_v3  ;;  %v621_v27 = vmul.f32 %v1748_v8, %v480_v4  ;;  %v356_v54 = vld [vmem:[%s1726_s8 + $0x100] sm:$0xff]  ;;  %v491_v61 = vld [vmem:[%s1734_s25 + $0x138] sm:$0xff] }
  0x71   : > { %v622_v28 = vmul.f32 %v1752_v10, %v481_v5  ;;  %v756_v29 = vadd.f32 %v1750_v9, %v617_v15  ;;  %v757_v30 = vadd.f32 %v1754_v11, %v618_v17  ;;  %v758_v31 = vadd.f32 %v1750_v9, %v619_v18  ;;  %v359_v1 = vld [vmem:[%s1726_s8 + $0x118] sm:$0xff]  ;;  %v360_v2 = vld [vmem:[%s1726_s8 + $0x120] sm:$0xff]  ;;  %v361_v13 = vld [vmem:[%s1726_s8 + $0x128] sm:$0xff] }
  0x72   : > { %v759_v32 = vadd.f32 %v1754_v11, %v620_v19  ;;  %1010 = vst [vmem:[%s1793_s10 + $0xb0] sm:$0xff] %v882_v22  ;;  %1011 = vst [vmem:[%s1793_s10 + $0xb8] sm:$0xff] %v883_v23  ;;  %v760_v36 = vadd.f32 %v1750_v9, %v621_v27  ;;  %v623_v38 = vmul.f32 %v1748_v8, %v482_v20  ;;  %v492_v15 = vld [vmem:[%s1734_s25 + $0x140] sm:$0xff]  ;;  %v493_v20 = vld [vmem:[%s1734_s25 + $0x148] sm:$0xff] }
  0x73   : > { %v761_v37 = vadd.f32 %v1754_v11, %v622_v28  ;;  %v624_v39 = vmul.f32 %v1752_v10, %v483_v21  ;;  %v884_v43 = vmul.f32 %v756_v29, %v348_v14  ;;  %v885_v44 = vmul.f32 %v757_v30, %v349_v16  ;;  %v362_v14 = vld [vmem:[%s1726_s8 + $0x130] sm:$0xff]  ;;  %v495_v22 = vld [vmem:[%s1734_s25 + $0x158] sm:$0xff]  ;;  %v496_v28 = vld [vmem:[%s1734_s25 + $0x160] sm:$0xff] }
  0x74   : > { %v886_v45 = vmul.f32 %v758_v31, %v350_v24  ;;  %v887_v46 = vmul.f32 %v759_v32, %v351_v25  ;;  %v888_v50 = vmul.f32 %v760_v36, %v352_v26  ;;  %v762_v52 = vadd.f32 %v1750_v9, %v623_v38  ;;  %v494_v21 = vld [vmem:[%s1734_s25 + $0x150] sm:$0xff]  ;;  %v363_v27 = vld [vmem:[%s1726_s8 + $0x138] sm:$0xff]  ;;  %v497_v29 = vld [vmem:[%s1734_s25 + $0x168] sm:$0xff] }
  0x75   : > { %v889_v51 = vmul.f32 %v761_v37, %v353_v33  ;;  %v763_v53 = vadd.f32 %v1754_v11, %v624_v39  ;;  %1012 = vst [vmem:[%s1793_s10 + $0xc0] sm:$0xff] %v884_v43  ;;  %1013 = vst [vmem:[%s1793_s10 + $0xc8] sm:$0xff] %v885_v44  ;;  %v625_v55 = vmul.f32 %v1748_v8, %v484_v35  ;;  %v365_v36 = vld [vmem:[%s1726_s8 + $0x148] sm:$0xff]  ;;  %v366_v44 = vld [vmem:[%s1726_s8 + $0x150] sm:$0xff] }
  0x76   : > { %1014 = vst [vmem:[%s1793_s10 + $0xd0] sm:$0xff] %v886_v45  ;;  %1015 = vst [vmem:[%s1793_s10 + $0xd8] sm:$0xff] %v887_v46  ;;  %v626_v57 = vmul.f32 %v1752_v10, %v485_v40  ;;  %v627_v58 = vmul.f32 %v1748_v8, %v486_v41  ;;  %v628_v59 = vmul.f32 %v1752_v10, %v487_v42  ;;  %v498_v40 = vld [vmem:[%s1734_s25 + $0x170] sm:$0xff]  ;;  %v499_v41 = vld [vmem:[%s1734_s25 + $0x178] sm:$0xff] }
  0x77   : > { %1016 = vst [vmem:[%s1793_s10 + $0xe0] sm:$0xff] %v888_v50  ;;  %1017 = vst [vmem:[%s1793_s10 + $0xe8] sm:$0xff] %v889_v51  ;;  %v890_v62 = vmul.f32 %v762_v52, %v354_v34  ;;  %v891_v63 = vmul.f32 %v763_v53, %v355_v47  ;;  %v629_v3 = vmul.f32 %v1748_v8, %v488_v48  ;;  %v364_v34 = vld [vmem:[%s1726_s8 + $0x140] sm:$0xff]  ;;  %v367_v45 = vld [vmem:[%s1726_s8 + $0x158] sm:$0xff] }
  0x78   : > { %v630_v4 = vmul.f32 %v1752_v10, %v489_v49  ;;  %v764_v5 = vadd.f32 %v1750_v9, %v625_v55  ;;  %v765_v6 = vadd.f32 %v1754_v11, %v626_v57  ;;  %v766_v7 = vadd.f32 %v1750_v9, %v627_v58  ;;  %v368_v46 = vld [vmem:[%s1726_s8 + $0x160] sm:$0xff]  ;;  %v369_v53 = vld [vmem:[%s1726_s8 + $0x168] sm:$0xff] }
  0x79   : > { %v767_v12 = vadd.f32 %v1754_v11, %v628_v59  ;;  %1018 = vst [vmem:[%s1793_s10 + $0xf0] sm:$0xff] %v890_v62  ;;  %1019 = vst [vmem:[%s1793_s10 + $0xf8] sm:$0xff] %v891_v63  ;;  %v768_v16 = vadd.f32 %v1750_v9, %v629_v3  ;;  %v631_v18 = vmul.f32 %v1748_v8, %v490_v60  ;;  %v500_v55 = vld [vmem:[%s1734_s25 + $0x180] sm:$0xff]  ;;  %v501_v60 = vld [vmem:[%s1734_s25 + $0x188] sm:$0xff] }
  0x7a   : > { %v769_v17 = vadd.f32 %v1754_v11, %v630_v4  ;;  %v632_v19 = vmul.f32 %v1752_v10, %v491_v61  ;;  %v892_v23 = vmul.f32 %v764_v5, %v356_v54  ;;  %v893_v24 = vmul.f32 %v765_v6, %v357_v56  ;;  %v370_v54 = vld [vmem:[%s1726_s8 + $0x170] sm:$0xff]  ;;  %v503_v62 = vld [vmem:[%s1734_s25 + $0x198] sm:$0xff]  ;;  %v504_v4 = vld [vmem:[%s1734_s25 + $0x1a0] sm:$0xff] }
  0x7b   : > { %v894_v25 = vmul.f32 %v766_v7, %v358_v0  ;;  %v895_v26 = vmul.f32 %v767_v12, %v359_v1  ;;  %v896_v30 = vmul.f32 %v768_v16, %v360_v2  ;;  %v770_v32 = vadd.f32 %v1750_v9, %v631_v18  ;;  %v502_v61 = vld [vmem:[%s1734_s25 + $0x190] sm:$0xff]  ;;  %v371_v3 = vld [vmem:[%s1726_s8 + $0x178] sm:$0xff]  ;;  %v505_v5 = vld [vmem:[%s1734_s25 + $0x1a8] sm:$0xff] }
  0x7c   : > { %v897_v31 = vmul.f32 %v769_v17, %v361_v13  ;;  %v771_v33 = vadd.f32 %v1754_v11, %v632_v19  ;;  %1020 = vst [vmem:[%s1793_s10 + $0x100] sm:$0xff] %v892_v23  ;;  %1021 = vst [vmem:[%s1793_s10 + $0x108] sm:$0xff] %v893_v24  ;;  %v633_v35 = vmul.f32 %v1748_v8, %v492_v15  ;;  %v373_v16 = vld [vmem:[%s1726_s8 + $0x188] sm:$0xff]  ;;  %v374_v24 = vld [vmem:[%s1726_s8 + $0x190] sm:$0xff] }
  0x7d   : > { %1022 = vst [vmem:[%s1793_s10 + $0x110] sm:$0xff] %v894_v25  ;;  %1023 = vst [vmem:[%s1793_s10 + $0x118] sm:$0xff] %v895_v26  ;;  %v634_v37 = vmul.f32 %v1752_v10, %v493_v20  ;;  %v635_v38 = vmul.f32 %v1748_v8, %v494_v21  ;;  %v636_v39 = vmul.f32 %v1752_v10, %v495_v22  ;;  %v506_v20 = vld [vmem:[%s1734_s25 + $0x1b0] sm:$0xff]  ;;  %v507_v21 = vld [vmem:[%s1734_s25 + $0x1b8] sm:$0xff] }
  0x7e   : > { %1024 = vst [vmem:[%s1793_s10 + $0x120] sm:$0xff] %v896_v30  ;;  %1025 = vst [vmem:[%s1793_s10 + $0x128] sm:$0xff] %v897_v31  ;;  %v898_v42 = vmul.f32 %v770_v32, %v362_v14  ;;  %v899_v43 = vmul.f32 %v771_v33, %v363_v27  ;;  %v637_v47 = vmul.f32 %v1748_v8, %v496_v28  ;;  %v372_v14 = vld [vmem:[%s1726_s8 + $0x180] sm:$0xff]  ;;  %v375_v25 = vld [vmem:[%s1726_s8 + $0x198] sm:$0xff] }
  0x7f   : > { %v638_v48 = vmul.f32 %v1752_v10, %v497_v29  ;;  %v772_v49 = vadd.f32 %v1750_v9, %v633_v35  ;;  %v773_v50 = vadd.f32 %v1754_v11, %v634_v37  ;;  %v774_v51 = vadd.f32 %v1750_v9, %v635_v38  ;;  %v376_v26 = vld [vmem:[%s1726_s8 + $0x1a0] sm:$0xff]  ;;  %v377_v33 = vld [vmem:[%s1726_s8 + $0x1a8] sm:$0xff] }
  0x80   : > { %v775_v52 = vadd.f32 %v1754_v11, %v636_v39  ;;  %1026 = vst [vmem:[%s1793_s10 + $0x130] sm:$0xff] %v898_v42  ;;  %1027 = vst [vmem:[%s1793_s10 + $0x138] sm:$0xff] %v899_v43  ;;  %v776_v56 = vadd.f32 %v1750_v9, %v637_v47  ;;  %v639_v58 = vmul.f32 %v1748_v8, %v498_v40  ;;  %v508_v35 = vld [vmem:[%s1734_s25 + $0x1c0] sm:$0xff]  ;;  %v509_v40 = vld [vmem:[%s1734_s25 + $0x1c8] sm:$0xff] }
  0x81   : > { %v777_v57 = vadd.f32 %v1754_v11, %v638_v48  ;;  %v640_v59 = vmul.f32 %v1752_v10, %v499_v41  ;;  %v900_v63 = vmul.f32 %v772_v49, %v364_v34  ;;  %v901_v0 = vmul.f32 %v773_v50, %v365_v36  ;;  %v378_v34 = vld [vmem:[%s1726_s8 + $0x1b0] sm:$0xff]  ;;  %v511_v42 = vld [vmem:[%s1734_s25 + $0x1d8] sm:$0xff]  ;;  %v512_v48 = vld [vmem:[%s1734_s25 + $0x1e0] sm:$0xff] }
  0x82   : > { %v902_v1 = vmul.f32 %v774_v51, %v366_v44  ;;  %v903_v2 = vmul.f32 %v775_v52, %v367_v45  ;;  %v904_v6 = vmul.f32 %v776_v56, %v368_v46  ;;  %v778_v12 = vadd.f32 %v1750_v9, %v639_v58  ;;  %v510_v41 = vld [vmem:[%s1734_s25 + $0x1d0] sm:$0xff]  ;;  %v379_v47 = vld [vmem:[%s1726_s8 + $0x1b8] sm:$0xff]  ;;  %v513_v49 = vld [vmem:[%s1734_s25 + $0x1e8] sm:$0xff] }
  0x83   : > { %v905_v7 = vmul.f32 %v777_v57, %v369_v53  ;;  %v779_v13 = vadd.f32 %v1754_v11, %v640_v59  ;;  %1028 = vst [vmem:[%s1793_s10 + $0x140] sm:$0xff] %v900_v63  ;;  %1029 = vst [vmem:[%s1793_s10 + $0x148] sm:$0xff] %v901_v0  ;;  %v641_v15 = vmul.f32 %v1748_v8, %v500_v55  ;;  %v381_v56 = vld [vmem:[%s1726_s8 + $0x1c8] sm:$0xff]  ;;  %v382_v0 = vld [vmem:[%s1726_s8 + $0x1d0] sm:$0xff] }
  0x84   : > { %1030 = vst [vmem:[%s1793_s10 + $0x150] sm:$0xff] %v902_v1  ;;  %1031 = vst [vmem:[%s1793_s10 + $0x158] sm:$0xff] %v903_v2  ;;  %v642_v17 = vmul.f32 %v1752_v10, %v501_v60  ;;  %v643_v18 = vmul.f32 %v1748_v8, %v502_v61  ;;  %v644_v19 = vmul.f32 %v1752_v10, %v503_v62  ;;  %v514_v60 = vld [vmem:[%s1734_s25 + $0x1f0] sm:$0xff]  ;;  %v515_v61 = vld [vmem:[%s1734_s25 + $0x1f8] sm:$0xff] }
  0x85   : > { %1032 = vst [vmem:[%s1793_s10 + $0x160] sm:$0xff] %v904_v6  ;;  %1033 = vst [vmem:[%s1793_s10 + $0x168] sm:$0xff] %v905_v7  ;;  %v906_v22 = vmul.f32 %v778_v12, %v370_v54  ;;  %v907_v23 = vmul.f32 %v779_v13, %v371_v3  ;;  %v645_v27 = vmul.f32 %v1748_v8, %v504_v4  ;;  %v380_v54 = vld [vmem:[%s1726_s8 + $0x1c0] sm:$0xff]  ;;  %v383_v1 = vld [vmem:[%s1726_s8 + $0x1d8] sm:$0xff] }
  0x86   : > { %v646_v28 = vmul.f32 %v1752_v10, %v505_v5  ;;  %v780_v29 = vadd.f32 %v1750_v9, %v641_v15  ;;  %v781_v30 = vadd.f32 %v1754_v11, %v642_v17  ;;  %v782_v31 = vadd.f32 %v1750_v9, %v643_v18  ;;  %v384_v2 = vld [vmem:[%s1726_s8 + $0x1e0] sm:$0xff]  ;;  %v385_v13 = vld [vmem:[%s1726_s8 + $0x1e8] sm:$0xff] }
  0x87   : > { %v783_v32 = vadd.f32 %v1754_v11, %v644_v19  ;;  %1034 = vst [vmem:[%s1793_s10 + $0x170] sm:$0xff] %v906_v22  ;;  %1035 = vst [vmem:[%s1793_s10 + $0x178] sm:$0xff] %v907_v23  ;;  %v784_v36 = vadd.f32 %v1750_v9, %v645_v27  ;;  %v647_v38 = vmul.f32 %v1748_v8, %v506_v20  ;;  %v516_v15 = vld [vmem:[%s1734_s25 + $0x200] sm:$0xff]  ;;  %v517_v20 = vld [vmem:[%s1734_s25 + $0x208] sm:$0xff] }
  0x88   : > { %v785_v37 = vadd.f32 %v1754_v11, %v646_v28  ;;  %v648_v39 = vmul.f32 %v1752_v10, %v507_v21  ;;  %v908_v43 = vmul.f32 %v780_v29, %v372_v14  ;;  %v909_v44 = vmul.f32 %v781_v30, %v373_v16  ;;  %v386_v14 = vld [vmem:[%s1726_s8 + $0x1f0] sm:$0xff]  ;;  %v519_v22 = vld [vmem:[%s1734_s25 + $0x218] sm:$0xff]  ;;  %v520_v28 = vld [vmem:[%s1734_s25 + $0x220] sm:$0xff] }
  0x89   : > { %v910_v45 = vmul.f32 %v782_v31, %v374_v24  ;;  %v911_v46 = vmul.f32 %v783_v32, %v375_v25  ;;  %v912_v50 = vmul.f32 %v784_v36, %v376_v26  ;;  %v786_v52 = vadd.f32 %v1750_v9, %v647_v38  ;;  %v518_v21 = vld [vmem:[%s1734_s25 + $0x210] sm:$0xff]  ;;  %v387_v27 = vld [vmem:[%s1726_s8 + $0x1f8] sm:$0xff]  ;;  %v521_v29 = vld [vmem:[%s1734_s25 + $0x228] sm:$0xff] }
  0x8a   : > { %v913_v51 = vmul.f32 %v785_v37, %v377_v33  ;;  %v787_v53 = vadd.f32 %v1754_v11, %v648_v39  ;;  %1036 = vst [vmem:[%s1793_s10 + $0x180] sm:$0xff] %v908_v43  ;;  %1037 = vst [vmem:[%s1793_s10 + $0x188] sm:$0xff] %v909_v44  ;;  %v649_v55 = vmul.f32 %v1748_v8, %v508_v35  ;;  %v389_v36 = vld [vmem:[%s1726_s8 + $0x208] sm:$0xff]  ;;  %v390_v44 = vld [vmem:[%s1726_s8 + $0x210] sm:$0xff] }
  0x8b   : > { %1038 = vst [vmem:[%s1793_s10 + $0x190] sm:$0xff] %v910_v45  ;;  %1039 = vst [vmem:[%s1793_s10 + $0x198] sm:$0xff] %v911_v46  ;;  %v650_v57 = vmul.f32 %v1752_v10, %v509_v40  ;;  %v651_v58 = vmul.f32 %v1748_v8, %v510_v41  ;;  %v652_v59 = vmul.f32 %v1752_v10, %v511_v42  ;;  %v522_v40 = vld [vmem:[%s1734_s25 + $0x230] sm:$0xff]  ;;  %v523_v41 = vld [vmem:[%s1734_s25 + $0x238] sm:$0xff] }
  0x8c   : > { %1040 = vst [vmem:[%s1793_s10 + $0x1a0] sm:$0xff] %v912_v50  ;;  %1041 = vst [vmem:[%s1793_s10 + $0x1a8] sm:$0xff] %v913_v51  ;;  %v914_v62 = vmul.f32 %v786_v52, %v378_v34  ;;  %v915_v63 = vmul.f32 %v787_v53, %v379_v47  ;;  %v653_v3 = vmul.f32 %v1748_v8, %v512_v48  ;;  %v388_v34 = vld [vmem:[%s1726_s8 + $0x200] sm:$0xff]  ;;  %v391_v45 = vld [vmem:[%s1726_s8 + $0x218] sm:$0xff] }
  0x8d   : > { %v654_v4 = vmul.f32 %v1752_v10, %v513_v49  ;;  %v788_v5 = vadd.f32 %v1750_v9, %v649_v55  ;;  %v789_v6 = vadd.f32 %v1754_v11, %v650_v57  ;;  %v790_v7 = vadd.f32 %v1750_v9, %v651_v58  ;;  %v392_v46 = vld [vmem:[%s1726_s8 + $0x220] sm:$0xff]  ;;  %v393_v53 = vld [vmem:[%s1726_s8 + $0x228] sm:$0xff] }
  0x8e   : > { %v791_v12 = vadd.f32 %v1754_v11, %v652_v59  ;;  %1042 = vst [vmem:[%s1793_s10 + $0x1b0] sm:$0xff] %v914_v62  ;;  %1043 = vst [vmem:[%s1793_s10 + $0x1b8] sm:$0xff] %v915_v63  ;;  %v792_v16 = vadd.f32 %v1750_v9, %v653_v3  ;;  %v655_v18 = vmul.f32 %v1748_v8, %v514_v60  ;;  %v524_v55 = vld [vmem:[%s1734_s25 + $0x240] sm:$0xff]  ;;  %v525_v60 = vld [vmem:[%s1734_s25 + $0x248] sm:$0xff] }
  0x8f   : > { %v793_v17 = vadd.f32 %v1754_v11, %v654_v4  ;;  %v656_v19 = vmul.f32 %v1752_v10, %v515_v61  ;;  %v916_v23 = vmul.f32 %v788_v5, %v380_v54  ;;  %v917_v24 = vmul.f32 %v789_v6, %v381_v56  ;;  %v394_v54 = vld [vmem:[%s1726_s8 + $0x230] sm:$0xff]  ;;  %v527_v62 = vld [vmem:[%s1734_s25 + $0x258] sm:$0xff]  ;;  %v528_v4 = vld [vmem:[%s1734_s25 + $0x260] sm:$0xff] }
  0x90   : > { %v918_v25 = vmul.f32 %v790_v7, %v382_v0  ;;  %v919_v26 = vmul.f32 %v791_v12, %v383_v1  ;;  %v920_v30 = vmul.f32 %v792_v16, %v384_v2  ;;  %v794_v32 = vadd.f32 %v1750_v9, %v655_v18  ;;  %v526_v61 = vld [vmem:[%s1734_s25 + $0x250] sm:$0xff]  ;;  %v395_v3 = vld [vmem:[%s1726_s8 + $0x238] sm:$0xff]  ;;  %v529_v5 = vld [vmem:[%s1734_s25 + $0x268] sm:$0xff] }
  0x91   : > { %v921_v31 = vmul.f32 %v793_v17, %v385_v13  ;;  %v795_v33 = vadd.f32 %v1754_v11, %v656_v19  ;;  %1044 = vst [vmem:[%s1793_s10 + $0x1c0] sm:$0xff] %v916_v23  ;;  %1045 = vst [vmem:[%s1793_s10 + $0x1c8] sm:$0xff] %v917_v24  ;;  %v657_v35 = vmul.f32 %v1748_v8, %v516_v15  ;;  %v397_v16 = vld [vmem:[%s1726_s8 + $0x248] sm:$0xff]  ;;  %v398_v24 = vld [vmem:[%s1726_s8 + $0x250] sm:$0xff] }
  0x92   : > { %1046 = vst [vmem:[%s1793_s10 + $0x1d0] sm:$0xff] %v918_v25  ;;  %1047 = vst [vmem:[%s1793_s10 + $0x1d8] sm:$0xff] %v919_v26  ;;  %v658_v37 = vmul.f32 %v1752_v10, %v517_v20  ;;  %v659_v38 = vmul.f32 %v1748_v8, %v518_v21  ;;  %v660_v39 = vmul.f32 %v1752_v10, %v519_v22  ;;  %v530_v20 = vld [vmem:[%s1734_s25 + $0x270] sm:$0xff]  ;;  %v531_v21 = vld [vmem:[%s1734_s25 + $0x278] sm:$0xff] }
  0x93   : > { %1048 = vst [vmem:[%s1793_s10 + $0x1e0] sm:$0xff] %v920_v30  ;;  %1049 = vst [vmem:[%s1793_s10 + $0x1e8] sm:$0xff] %v921_v31  ;;  %v922_v42 = vmul.f32 %v794_v32, %v386_v14  ;;  %v923_v43 = vmul.f32 %v795_v33, %v387_v27  ;;  %v661_v47 = vmul.f32 %v1748_v8, %v520_v28  ;;  %v396_v14 = vld [vmem:[%s1726_s8 + $0x240] sm:$0xff]  ;;  %v399_v25 = vld [vmem:[%s1726_s8 + $0x258] sm:$0xff] }
  0x94   : > { %v662_v48 = vmul.f32 %v1752_v10, %v521_v29  ;;  %v796_v49 = vadd.f32 %v1750_v9, %v657_v35  ;;  %v797_v50 = vadd.f32 %v1754_v11, %v658_v37  ;;  %v798_v51 = vadd.f32 %v1750_v9, %v659_v38  ;;  %v400_v26 = vld [vmem:[%s1726_s8 + $0x260] sm:$0xff]  ;;  %v401_v33 = vld [vmem:[%s1726_s8 + $0x268] sm:$0xff] }
  0x95   : > { %v799_v52 = vadd.f32 %v1754_v11, %v660_v39  ;;  %1050 = vst [vmem:[%s1793_s10 + $0x1f0] sm:$0xff] %v922_v42  ;;  %1051 = vst [vmem:[%s1793_s10 + $0x1f8] sm:$0xff] %v923_v43  ;;  %v800_v56 = vadd.f32 %v1750_v9, %v661_v47  ;;  %v663_v58 = vmul.f32 %v1748_v8, %v522_v40  ;;  %v532_v35 = vld [vmem:[%s1734_s25 + $0x280] sm:$0xff]  ;;  %v533_v40 = vld [vmem:[%s1734_s25 + $0x288] sm:$0xff] }
  0x96   : > { %v801_v57 = vadd.f32 %v1754_v11, %v662_v48  ;;  %v664_v59 = vmul.f32 %v1752_v10, %v523_v41  ;;  %v924_v63 = vmul.f32 %v796_v49, %v388_v34  ;;  %v925_v0 = vmul.f32 %v797_v50, %v389_v36  ;;  %v402_v34 = vld [vmem:[%s1726_s8 + $0x270] sm:$0xff]  ;;  %v535_v42 = vld [vmem:[%s1734_s25 + $0x298] sm:$0xff]  ;;  %v536_v48 = vld [vmem:[%s1734_s25 + $0x2a0] sm:$0xff] }
  0x97   : > { %v926_v1 = vmul.f32 %v798_v51, %v390_v44  ;;  %v927_v2 = vmul.f32 %v799_v52, %v391_v45  ;;  %v928_v6 = vmul.f32 %v800_v56, %v392_v46  ;;  %v802_v12 = vadd.f32 %v1750_v9, %v663_v58  ;;  %v534_v41 = vld [vmem:[%s1734_s25 + $0x290] sm:$0xff]  ;;  %v403_v47 = vld [vmem:[%s1726_s8 + $0x278] sm:$0xff]  ;;  %v537_v49 = vld [vmem:[%s1734_s25 + $0x2a8] sm:$0xff] }
  0x98   : > { %v929_v7 = vmul.f32 %v801_v57, %v393_v53  ;;  %v803_v13 = vadd.f32 %v1754_v11, %v664_v59  ;;  %1052 = vst [vmem:[%s1793_s10 + $0x200] sm:$0xff] %v924_v63  ;;  %1053 = vst [vmem:[%s1793_s10 + $0x208] sm:$0xff] %v925_v0  ;;  %v665_v15 = vmul.f32 %v1748_v8, %v524_v55  ;;  %v405_v56 = vld [vmem:[%s1726_s8 + $0x288] sm:$0xff]  ;;  %v406_v0 = vld [vmem:[%s1726_s8 + $0x290] sm:$0xff] }
  0x99   : > { %1054 = vst [vmem:[%s1793_s10 + $0x210] sm:$0xff] %v926_v1  ;;  %1055 = vst [vmem:[%s1793_s10 + $0x218] sm:$0xff] %v927_v2  ;;  %v666_v17 = vmul.f32 %v1752_v10, %v525_v60  ;;  %v667_v18 = vmul.f32 %v1748_v8, %v526_v61  ;;  %v668_v19 = vmul.f32 %v1752_v10, %v527_v62  ;;  %v538_v60 = vld [vmem:[%s1734_s25 + $0x2b0] sm:$0xff]  ;;  %v539_v61 = vld [vmem:[%s1734_s25 + $0x2b8] sm:$0xff] }
  0x9a   : > { %1056 = vst [vmem:[%s1793_s10 + $0x220] sm:$0xff] %v928_v6  ;;  %1057 = vst [vmem:[%s1793_s10 + $0x228] sm:$0xff] %v929_v7  ;;  %v930_v22 = vmul.f32 %v802_v12, %v394_v54  ;;  %v931_v23 = vmul.f32 %v803_v13, %v395_v3  ;;  %v669_v27 = vmul.f32 %v1748_v8, %v528_v4  ;;  %v404_v54 = vld [vmem:[%s1726_s8 + $0x280] sm:$0xff]  ;;  %v407_v1 = vld [vmem:[%s1726_s8 + $0x298] sm:$0xff] }
  0x9b   : > { %v670_v28 = vmul.f32 %v1752_v10, %v529_v5  ;;  %v804_v29 = vadd.f32 %v1750_v9, %v665_v15  ;;  %v805_v30 = vadd.f32 %v1754_v11, %v666_v17  ;;  %v806_v31 = vadd.f32 %v1750_v9, %v667_v18  ;;  %v408_v2 = vld [vmem:[%s1726_s8 + $0x2a0] sm:$0xff]  ;;  %v409_v13 = vld [vmem:[%s1726_s8 + $0x2a8] sm:$0xff] }
  0x9c   : > { %v807_v32 = vadd.f32 %v1754_v11, %v668_v19  ;;  %1058 = vst [vmem:[%s1793_s10 + $0x230] sm:$0xff] %v930_v22  ;;  %1059 = vst [vmem:[%s1793_s10 + $0x238] sm:$0xff] %v931_v23  ;;  %v808_v36 = vadd.f32 %v1750_v9, %v669_v27  ;;  %v671_v38 = vmul.f32 %v1748_v8, %v530_v20  ;;  %v540_v15 = vld [vmem:[%s1734_s25 + $0x2c0] sm:$0xff]  ;;  %v541_v20 = vld [vmem:[%s1734_s25 + $0x2c8] sm:$0xff] }
  0x9d   : > { %v809_v37 = vadd.f32 %v1754_v11, %v670_v28  ;;  %v672_v39 = vmul.f32 %v1752_v10, %v531_v21  ;;  %v932_v43 = vmul.f32 %v804_v29, %v396_v14  ;;  %v933_v44 = vmul.f32 %v805_v30, %v397_v16  ;;  %v410_v14 = vld [vmem:[%s1726_s8 + $0x2b0] sm:$0xff]  ;;  %v543_v22 = vld [vmem:[%s1734_s25 + $0x2d8] sm:$0xff]  ;;  %v544_v28 = vld [vmem:[%s1734_s25 + $0x2e0] sm:$0xff] }
  0x9e   : > { %v934_v45 = vmul.f32 %v806_v31, %v398_v24  ;;  %v935_v46 = vmul.f32 %v807_v32, %v399_v25  ;;  %v936_v50 = vmul.f32 %v808_v36, %v400_v26  ;;  %v810_v52 = vadd.f32 %v1750_v9, %v671_v38  ;;  %v542_v21 = vld [vmem:[%s1734_s25 + $0x2d0] sm:$0xff]  ;;  %v411_v27 = vld [vmem:[%s1726_s8 + $0x2b8] sm:$0xff]  ;;  %v545_v29 = vld [vmem:[%s1734_s25 + $0x2e8] sm:$0xff] }
  0x9f   : > { %v937_v51 = vmul.f32 %v809_v37, %v401_v33  ;;  %v811_v53 = vadd.f32 %v1754_v11, %v672_v39  ;;  %1060 = vst [vmem:[%s1793_s10 + $0x240] sm:$0xff] %v932_v43  ;;  %1061 = vst [vmem:[%s1793_s10 + $0x248] sm:$0xff] %v933_v44  ;;  %v673_v55 = vmul.f32 %v1748_v8, %v532_v35  ;;  %v413_v36 = vld [vmem:[%s1726_s8 + $0x2c8] sm:$0xff]  ;;  %v414_v44 = vld [vmem:[%s1726_s8 + $0x2d0] sm:$0xff] }
  0xa0   : > { %1062 = vst [vmem:[%s1793_s10 + $0x250] sm:$0xff] %v934_v45  ;;  %1063 = vst [vmem:[%s1793_s10 + $0x258] sm:$0xff] %v935_v46  ;;  %v674_v57 = vmul.f32 %v1752_v10, %v533_v40  ;;  %v675_v58 = vmul.f32 %v1748_v8, %v534_v41  ;;  %v676_v59 = vmul.f32 %v1752_v10, %v535_v42  ;;  %v546_v40 = vld [vmem:[%s1734_s25 + $0x2f0] sm:$0xff]  ;;  %v547_v41 = vld [vmem:[%s1734_s25 + $0x2f8] sm:$0xff] }
  0xa1   : > { %1064 = vst [vmem:[%s1793_s10 + $0x260] sm:$0xff] %v936_v50  ;;  %1065 = vst [vmem:[%s1793_s10 + $0x268] sm:$0xff] %v937_v51  ;;  %v938_v62 = vmul.f32 %v810_v52, %v402_v34  ;;  %v939_v63 = vmul.f32 %v811_v53, %v403_v47  ;;  %v677_v3 = vmul.f32 %v1748_v8, %v536_v48  ;;  %v412_v34 = vld [vmem:[%s1726_s8 + $0x2c0] sm:$0xff]  ;;  %v415_v45 = vld [vmem:[%s1726_s8 + $0x2d8] sm:$0xff] }
  0xa2   : > { %v678_v4 = vmul.f32 %v1752_v10, %v537_v49  ;;  %v812_v5 = vadd.f32 %v1750_v9, %v673_v55  ;;  %v813_v6 = vadd.f32 %v1754_v11, %v674_v57  ;;  %v814_v7 = vadd.f32 %v1750_v9, %v675_v58  ;;  %v416_v46 = vld [vmem:[%s1726_s8 + $0x2e0] sm:$0xff]  ;;  %v417_v53 = vld [vmem:[%s1726_s8 + $0x2e8] sm:$0xff] }
  0xa3   : > { %v815_v12 = vadd.f32 %v1754_v11, %v676_v59  ;;  %1066 = vst [vmem:[%s1793_s10 + $0x270] sm:$0xff] %v938_v62  ;;  %1067 = vst [vmem:[%s1793_s10 + $0x278] sm:$0xff] %v939_v63  ;;  %v816_v16 = vadd.f32 %v1750_v9, %v677_v3  ;;  %v679_v18 = vmul.f32 %v1748_v8, %v538_v60  ;;  %v548_v55 = vld [vmem:[%s1734_s25 + $0x300] sm:$0xff]  ;;  %v549_v60 = vld [vmem:[%s1734_s25 + $0x308] sm:$0xff] }
  0xa4   : > { %v817_v17 = vadd.f32 %v1754_v11, %v678_v4  ;;  %v680_v19 = vmul.f32 %v1752_v10, %v539_v61  ;;  %v940_v23 = vmul.f32 %v812_v5, %v404_v54  ;;  %v941_v24 = vmul.f32 %v813_v6, %v405_v56  ;;  %v418_v54 = vld [vmem:[%s1726_s8 + $0x2f0] sm:$0xff]  ;;  %v551_v62 = vld [vmem:[%s1734_s25 + $0x318] sm:$0xff]  ;;  %v552_v4 = vld [vmem:[%s1734_s25 + $0x320] sm:$0xff] }
  0xa5   : > { %v942_v25 = vmul.f32 %v814_v7, %v406_v0  ;;  %v943_v26 = vmul.f32 %v815_v12, %v407_v1  ;;  %v944_v30 = vmul.f32 %v816_v16, %v408_v2  ;;  %v818_v32 = vadd.f32 %v1750_v9, %v679_v18  ;;  %v550_v61 = vld [vmem:[%s1734_s25 + $0x310] sm:$0xff]  ;;  %v419_v3 = vld [vmem:[%s1726_s8 + $0x2f8] sm:$0xff]  ;;  %v553_v5 = vld [vmem:[%s1734_s25 + $0x328] sm:$0xff] }
  0xa6   : > { %v945_v31 = vmul.f32 %v817_v17, %v409_v13  ;;  %v819_v33 = vadd.f32 %v1754_v11, %v680_v19  ;;  %1068 = vst [vmem:[%s1793_s10 + $0x280] sm:$0xff] %v940_v23  ;;  %1069 = vst [vmem:[%s1793_s10 + $0x288] sm:$0xff] %v941_v24  ;;  %v681_v35 = vmul.f32 %v1748_v8, %v540_v15  ;;  %v421_v16 = vld [vmem:[%s1726_s8 + $0x308] sm:$0xff]  ;;  %v422_v24 = vld [vmem:[%s1726_s8 + $0x310] sm:$0xff] }
  0xa7   : > { %1070 = vst [vmem:[%s1793_s10 + $0x290] sm:$0xff] %v942_v25  ;;  %1071 = vst [vmem:[%s1793_s10 + $0x298] sm:$0xff] %v943_v26  ;;  %v682_v37 = vmul.f32 %v1752_v10, %v541_v20  ;;  %v683_v38 = vmul.f32 %v1748_v8, %v542_v21  ;;  %v684_v39 = vmul.f32 %v1752_v10, %v543_v22  ;;  %v554_v20 = vld [vmem:[%s1734_s25 + $0x330] sm:$0xff]  ;;  %v555_v21 = vld [vmem:[%s1734_s25 + $0x338] sm:$0xff] }
  0xa8   : > { %1072 = vst [vmem:[%s1793_s10 + $0x2a0] sm:$0xff] %v944_v30  ;;  %1073 = vst [vmem:[%s1793_s10 + $0x2a8] sm:$0xff] %v945_v31  ;;  %v946_v42 = vmul.f32 %v818_v32, %v410_v14  ;;  %v947_v43 = vmul.f32 %v819_v33, %v411_v27  ;;  %v685_v47 = vmul.f32 %v1748_v8, %v544_v28  ;;  %v420_v14 = vld [vmem:[%s1726_s8 + $0x300] sm:$0xff]  ;;  %v423_v25 = vld [vmem:[%s1726_s8 + $0x318] sm:$0xff] }
  0xa9   : > { %v686_v48 = vmul.f32 %v1752_v10, %v545_v29  ;;  %v820_v49 = vadd.f32 %v1750_v9, %v681_v35  ;;  %v821_v50 = vadd.f32 %v1754_v11, %v682_v37  ;;  %v822_v51 = vadd.f32 %v1750_v9, %v683_v38  ;;  %v424_v26 = vld [vmem:[%s1726_s8 + $0x320] sm:$0xff]  ;;  %v425_v33 = vld [vmem:[%s1726_s8 + $0x328] sm:$0xff] }
  0xaa   : > { %v823_v52 = vadd.f32 %v1754_v11, %v684_v39  ;;  %1074 = vst [vmem:[%s1793_s10 + $0x2b0] sm:$0xff] %v946_v42  ;;  %1075 = vst [vmem:[%s1793_s10 + $0x2b8] sm:$0xff] %v947_v43  ;;  %v824_v56 = vadd.f32 %v1750_v9, %v685_v47  ;;  %v687_v58 = vmul.f32 %v1748_v8, %v546_v40  ;;  %v556_v35 = vld [vmem:[%s1734_s25 + $0x340] sm:$0xff]  ;;  %v557_v40 = vld [vmem:[%s1734_s25 + $0x348] sm:$0xff] }
  0xab   : > { %v825_v57 = vadd.f32 %v1754_v11, %v686_v48  ;;  %v688_v59 = vmul.f32 %v1752_v10, %v547_v41  ;;  %v948_v63 = vmul.f32 %v820_v49, %v412_v34  ;;  %v949_v0 = vmul.f32 %v821_v50, %v413_v36  ;;  %v426_v34 = vld [vmem:[%s1726_s8 + $0x330] sm:$0xff]  ;;  %v559_v42 = vld [vmem:[%s1734_s25 + $0x358] sm:$0xff]  ;;  %v560_v48 = vld [vmem:[%s1734_s25 + $0x360] sm:$0xff] }
  0xac   : > { %v950_v1 = vmul.f32 %v822_v51, %v414_v44  ;;  %v951_v2 = vmul.f32 %v823_v52, %v415_v45  ;;  %v952_v6 = vmul.f32 %v824_v56, %v416_v46  ;;  %v826_v12 = vadd.f32 %v1750_v9, %v687_v58  ;;  %v558_v41 = vld [vmem:[%s1734_s25 + $0x350] sm:$0xff]  ;;  %v427_v47 = vld [vmem:[%s1726_s8 + $0x338] sm:$0xff]  ;;  %v561_v49 = vld [vmem:[%s1734_s25 + $0x368] sm:$0xff] }
  0xad   : > { %v953_v7 = vmul.f32 %v825_v57, %v417_v53  ;;  %v827_v13 = vadd.f32 %v1754_v11, %v688_v59  ;;  %1076 = vst [vmem:[%s1793_s10 + $0x2c0] sm:$0xff] %v948_v63  ;;  %1077 = vst [vmem:[%s1793_s10 + $0x2c8] sm:$0xff] %v949_v0  ;;  %v689_v15 = vmul.f32 %v1748_v8, %v548_v55  ;;  %v429_v56 = vld [vmem:[%s1726_s8 + $0x348] sm:$0xff]  ;;  %v430_v0 = vld [vmem:[%s1726_s8 + $0x350] sm:$0xff] }
  0xae   : > { %1078 = vst [vmem:[%s1793_s10 + $0x2d0] sm:$0xff] %v950_v1  ;;  %1079 = vst [vmem:[%s1793_s10 + $0x2d8] sm:$0xff] %v951_v2  ;;  %v690_v17 = vmul.f32 %v1752_v10, %v549_v60  ;;  %v691_v18 = vmul.f32 %v1748_v8, %v550_v61  ;;  %v692_v19 = vmul.f32 %v1752_v10, %v551_v62  ;;  %v562_v60 = vld [vmem:[%s1734_s25 + $0x370] sm:$0xff]  ;;  %v563_v61 = vld [vmem:[%s1734_s25 + $0x378] sm:$0xff] }
  0xaf   : > { %1080 = vst [vmem:[%s1793_s10 + $0x2e0] sm:$0xff] %v952_v6  ;;  %1081 = vst [vmem:[%s1793_s10 + $0x2e8] sm:$0xff] %v953_v7  ;;  %v954_v22 = vmul.f32 %v826_v12, %v418_v54  ;;  %v955_v23 = vmul.f32 %v827_v13, %v419_v3  ;;  %v693_v27 = vmul.f32 %v1748_v8, %v552_v4  ;;  %v428_v54 = vld [vmem:[%s1726_s8 + $0x340] sm:$0xff]  ;;  %v431_v1 = vld [vmem:[%s1726_s8 + $0x358] sm:$0xff] }
  0xb0   : > { %v694_v28 = vmul.f32 %v1752_v10, %v553_v5  ;;  %v828_v29 = vadd.f32 %v1750_v9, %v689_v15  ;;  %v829_v30 = vadd.f32 %v1754_v11, %v690_v17  ;;  %v830_v31 = vadd.f32 %v1750_v9, %v691_v18  ;;  %v432_v2 = vld [vmem:[%s1726_s8 + $0x360] sm:$0xff]  ;;  %v433_v13 = vld [vmem:[%s1726_s8 + $0x368] sm:$0xff] }
  0xb1   : > { %v831_v32 = vadd.f32 %v1754_v11, %v692_v19  ;;  %1082 = vst [vmem:[%s1793_s10 + $0x2f0] sm:$0xff] %v954_v22  ;;  %1083 = vst [vmem:[%s1793_s10 + $0x2f8] sm:$0xff] %v955_v23  ;;  %v832_v36 = vadd.f32 %v1750_v9, %v693_v27  ;;  %v695_v38 = vmul.f32 %v1748_v8, %v554_v20  ;;  %v564_v15 = vld [vmem:[%s1734_s25 + $0x380] sm:$0xff]  ;;  %v565_v20 = vld [vmem:[%s1734_s25 + $0x388] sm:$0xff] }
  0xb2   : > { %v833_v37 = vadd.f32 %v1754_v11, %v694_v28  ;;  %v696_v39 = vmul.f32 %v1752_v10, %v555_v21  ;;  %v956_v43 = vmul.f32 %v828_v29, %v420_v14  ;;  %v957_v44 = vmul.f32 %v829_v30, %v421_v16  ;;  %v434_v14 = vld [vmem:[%s1726_s8 + $0x370] sm:$0xff]  ;;  %v567_v22 = vld [vmem:[%s1734_s25 + $0x398] sm:$0xff]  ;;  %v568_v28 = vld [vmem:[%s1734_s25 + $0x3a0] sm:$0xff] }
  0xb3   : > { %v958_v45 = vmul.f32 %v830_v31, %v422_v24  ;;  %v959_v46 = vmul.f32 %v831_v32, %v423_v25  ;;  %v960_v50 = vmul.f32 %v832_v36, %v424_v26  ;;  %v834_v52 = vadd.f32 %v1750_v9, %v695_v38  ;;  %v566_v21 = vld [vmem:[%s1734_s25 + $0x390] sm:$0xff]  ;;  %v435_v27 = vld [vmem:[%s1726_s8 + $0x378] sm:$0xff]  ;;  %v569_v29 = vld [vmem:[%s1734_s25 + $0x3a8] sm:$0xff] }
  0xb4   : > { %v961_v51 = vmul.f32 %v833_v37, %v425_v33  ;;  %v835_v53 = vadd.f32 %v1754_v11, %v696_v39  ;;  %1084 = vst [vmem:[%s1793_s10 + $0x300] sm:$0xff] %v956_v43  ;;  %1085 = vst [vmem:[%s1793_s10 + $0x308] sm:$0xff] %v957_v44  ;;  %v697_v55 = vmul.f32 %v1748_v8, %v556_v35  ;;  %v437_v36 = vld [vmem:[%s1726_s8 + $0x388] sm:$0xff]  ;;  %v438_v44 = vld [vmem:[%s1726_s8 + $0x390] sm:$0xff] }
  0xb5   : > { %1086 = vst [vmem:[%s1793_s10 + $0x310] sm:$0xff] %v958_v45  ;;  %1087 = vst [vmem:[%s1793_s10 + $0x318] sm:$0xff] %v959_v46  ;;  %v698_v57 = vmul.f32 %v1752_v10, %v557_v40  ;;  %v699_v58 = vmul.f32 %v1748_v8, %v558_v41  ;;  %v700_v59 = vmul.f32 %v1752_v10, %v559_v42  ;;  %v570_v40 = vld [vmem:[%s1734_s25 + $0x3b0] sm:$0xff]  ;;  %v571_v41 = vld [vmem:[%s1734_s25 + $0x3b8] sm:$0xff] }
  0xb6   : > { %1088 = vst [vmem:[%s1793_s10 + $0x320] sm:$0xff] %v960_v50  ;;  %1089 = vst [vmem:[%s1793_s10 + $0x328] sm:$0xff] %v961_v51  ;;  %v962_v62 = vmul.f32 %v834_v52, %v426_v34  ;;  %v963_v63 = vmul.f32 %v835_v53, %v427_v47  ;;  %v701_v3 = vmul.f32 %v1748_v8, %v560_v48  ;;  %v436_v34 = vld [vmem:[%s1726_s8 + $0x380] sm:$0xff]  ;;  %v439_v45 = vld [vmem:[%s1726_s8 + $0x398] sm:$0xff] }
  0xb7   : > { %v702_v4 = vmul.f32 %v1752_v10, %v561_v49  ;;  %v836_v5 = vadd.f32 %v1750_v9, %v697_v55  ;;  %v837_v6 = vadd.f32 %v1754_v11, %v698_v57  ;;  %v838_v7 = vadd.f32 %v1750_v9, %v699_v58  ;;  %v440_v46 = vld [vmem:[%s1726_s8 + $0x3a0] sm:$0xff]  ;;  %v441_v53 = vld [vmem:[%s1726_s8 + $0x3a8] sm:$0xff] }
  0xb8   : > { %v839_v12 = vadd.f32 %v1754_v11, %v700_v59  ;;  %1090 = vst [vmem:[%s1793_s10 + $0x330] sm:$0xff] %v962_v62  ;;  %1091 = vst [vmem:[%s1793_s10 + $0x338] sm:$0xff] %v963_v63  ;;  %v840_v16 = vadd.f32 %v1750_v9, %v701_v3  ;;  %v703_v18 = vmul.f32 %v1748_v8, %v562_v60  ;;  %v572_v55 = vld [vmem:[%s1734_s25 + $0x3c0] sm:$0xff]  ;;  %v573_v60 = vld [vmem:[%s1734_s25 + $0x3c8] sm:$0xff] }
  0xb9   : > { %v841_v17 = vadd.f32 %v1754_v11, %v702_v4  ;;  %v704_v19 = vmul.f32 %v1752_v10, %v563_v61  ;;  %v964_v23 = vmul.f32 %v836_v5, %v428_v54  ;;  %v965_v24 = vmul.f32 %v837_v6, %v429_v56  ;;  %v442_v54 = vld [vmem:[%s1726_s8 + $0x3b0] sm:$0xff]  ;;  %v575_v62 = vld [vmem:[%s1734_s25 + $0x3d8] sm:$0xff]  ;;  %v576_v4 = vld [vmem:[%s1734_s25 + $0x3e0] sm:$0xff] }
  0xba   : > { %v966_v25 = vmul.f32 %v838_v7, %v430_v0  ;;  %v967_v26 = vmul.f32 %v839_v12, %v431_v1  ;;  %v968_v30 = vmul.f32 %v840_v16, %v432_v2  ;;  %v842_v32 = vadd.f32 %v1750_v9, %v703_v18  ;;  %v574_v61 = vld [vmem:[%s1734_s25 + $0x3d0] sm:$0xff]  ;;  %v443_v3 = vld [vmem:[%s1726_s8 + $0x3b8] sm:$0xff]  ;;  %v577_v5 = vld [vmem:[%s1734_s25 + $0x3e8] sm:$0xff] }
  0xbb   : > { %v969_v31 = vmul.f32 %v841_v17, %v433_v13  ;;  %v843_v33 = vadd.f32 %v1754_v11, %v704_v19  ;;  %1092 = vst [vmem:[%s1793_s10 + $0x340] sm:$0xff] %v964_v23  ;;  %1093 = vst [vmem:[%s1793_s10 + $0x348] sm:$0xff] %v965_v24  ;;  %v705_v35 = vmul.f32 %v1748_v8, %v564_v15  ;;  %v578_v19 = vld [vmem:[%s1734_s25 + $0x3f0] sm:$0xff]  ;;  %v445_v23 = vld [vmem:[%s1726_s8 + $0x3c8] sm:$0xff] }
  0xbc   : > { %1094 = vst [vmem:[%s1793_s10 + $0x350] sm:$0xff] %v966_v25  ;;  %1095 = vst [vmem:[%s1793_s10 + $0x358] sm:$0xff] %v967_v26  ;;  %v706_v37 = vmul.f32 %v1752_v10, %v565_v20  ;;  %v707_v38 = vmul.f32 %v1748_v8, %v566_v21  ;;  %v708_v39 = vmul.f32 %v1752_v10, %v567_v22  ;;  %v579_v20 = vld [vmem:[%s1734_s25 + $0x3f8] sm:$0xff]  ;;  %v446_v24 = vld [vmem:[%s1726_s8 + $0x3d0] sm:$0xff] }
  0xbd   : > { %1096 = vst [vmem:[%s1793_s10 + $0x360] sm:$0xff] %v968_v30  ;;  %1097 = vst [vmem:[%s1793_s10 + $0x368] sm:$0xff] %v969_v31  ;;  %v970_v42 = vmul.f32 %v842_v32, %v434_v14  ;;  %v971_v43 = vmul.f32 %v843_v33, %v435_v27  ;;  %v709_v47 = vmul.f32 %v1748_v8, %v568_v28  ;;  %v444_v14 = vld [vmem:[%s1726_s8 + $0x3c0] sm:$0xff]  ;;  %v447_v25 = vld [vmem:[%s1726_s8 + $0x3d8] sm:$0xff] }
  0xbe   : > { %v710_v48 = vmul.f32 %v1752_v10, %v569_v29  ;;  %v844_v49 = vadd.f32 %v1750_v9, %v705_v35  ;;  %v845_v50 = vadd.f32 %v1754_v11, %v706_v37  ;;  %v846_v51 = vadd.f32 %v1750_v9, %v707_v38  ;;  %v448_v32 = vld [vmem:[%s1726_s8 + $0x3e0] sm:$0xff]  ;;  %v449_v33 = vld [vmem:[%s1726_s8 + $0x3e8] sm:$0xff] }
  0xbf   : > { %v847_v52 = vadd.f32 %v1754_v11, %v708_v39  ;;  %1098 = vst [vmem:[%s1793_s10 + $0x370] sm:$0xff] %v970_v42  ;;  %1099 = vst [vmem:[%s1793_s10 + $0x378] sm:$0xff] %v971_v43  ;;  %v848_v56 = vadd.f32 %v1750_v9, %v709_v47  ;;  %v711_v58 = vmul.f32 %v1748_v8, %v570_v40  ;;  %v450_v42 = vld [vmem:[%s1726_s8 + $0x3f0] sm:$0xff]  ;;  %v451_v43 = vld [vmem:[%s1726_s8 + $0x3f8] sm:$0xff]  ;;  %s1435_s8 = sshll.u32 %s1523_s13, 4  ;;  %s1436_s8 = int_to_ptr.vmem [resolvable:$false] %s1435_s8 }
  0xc0   : > { %v849_v57 = vadd.f32 %v1754_v11, %v710_v48  ;;  %v712_v59 = vmul.f32 %v1752_v10, %v571_v41  ;;  %v972_v63 = vmul.f32 %v844_v49, %v436_v34  ;;  %v973_v0 = vmul.f32 %v845_v50, %v437_v36  ;;  %s1437_s5 = scalar_lea.vmem %s1436_s8, 32768  ;;  %p1438_p7 = scmp.lt.s32.totalorder %s2400_s22, %s1436_s8 }
  0xc1   : > { %v974_v1 = vmul.f32 %v846_v51, %v438_v44  ;;  %v975_v2 = vmul.f32 %v847_v52, %v439_v45  ;;  %v976_v6 = vmul.f32 %v848_v56, %v440_v46  ;;  %v850_v12 = vadd.f32 %v1750_v9, %v711_v58  ;;  %p1439_p10 = scmp.lt.s32.totalorder %s1437_s5, %s1431_s26 }
  0xc2   : > { %v977_v7 = vmul.f32 %v849_v57, %v441_v53  ;;  %v851_v13 = vadd.f32 %v1754_v11, %v712_v59  ;;  %1100 = vst [vmem:[%s1793_s10 + $0x380] sm:$0xff] %v972_v63  ;;  %1101 = vst [vmem:[%s1793_s10 + $0x388] sm:$0xff] %v973_v0  ;;  %v713_v15 = vmul.f32 %v1748_v8, %v572_v55 }
  0xc3   : > { %1102 = vst [vmem:[%s1793_s10 + $0x390] sm:$0xff] %v974_v1  ;;  %1103 = vst [vmem:[%s1793_s10 + $0x398] sm:$0xff] %v975_v2  ;;  %v714_v16 = vmul.f32 %v1752_v10, %v573_v60  ;;  %v715_v17 = vmul.f32 %v1748_v8, %v574_v61  ;;  %v716_v18 = vmul.f32 %v1752_v10, %v575_v62  ;;  %p1440_p9 = por %p1439_p10, %p1438_p7 }
  0xc4   : > { %1104 = vst [vmem:[%s1793_s10 + $0x3a0] sm:$0xff] %v976_v6  ;;  %1105 = vst [vmem:[%s1793_s10 + $0x3a8] sm:$0xff] %v977_v7  ;;  %v978_v21 = vmul.f32 %v850_v12, %v442_v54  ;;  %v979_v22 = vmul.f32 %v851_v13, %v443_v3  ;;  %v717_v26 = vmul.f32 %v1748_v8, %v576_v4 }
  0xc5   : > { %v718_v27 = vmul.f32 %v1752_v10, %v577_v5  ;;  %v852_v28 = vadd.f32 %v1750_v9, %v713_v15  ;;  %v853_v29 = vadd.f32 %v1754_v11, %v714_v16  ;;  %v854_v30 = vadd.f32 %v1750_v9, %v715_v17  ;;  %p1441_p11 = pnand %p1440_p9, %p1434_p13 }
  0xc6   : > { %v855_v31 = vadd.f32 %v1754_v11, %v716_v18  ;;  %1106 = vst [vmem:[%s1793_s10 + $0x3b0] sm:$0xff] %v978_v21  ;;  %1107 = vst [vmem:[%s1793_s10 + $0x3b8] sm:$0xff] %v979_v22  ;;  %v856_v34 = vadd.f32 %v1750_v9, %v717_v26  ;;  %v719_v36 = vmul.f32 %v1748_v8, %v578_v19 }
  0xc7   : > { %v857_v35 = vadd.f32 %v1754_v11, %v718_v27  ;;  %v720_v37 = vmul.f32 %v1752_v10, %v579_v20  ;;  %v980_v38 = vmul.f32 %v852_v28, %v444_v14  ;;  %v981_v39 = vmul.f32 %v853_v29, %v445_v23 }
  0xc8   : > { %v982_v40 = vmul.f32 %v854_v30, %v446_v24  ;;  %v983_v41 = vmul.f32 %v855_v31, %v447_v25  ;;  %v984_v44 = vmul.f32 %v856_v34, %v448_v32  ;;  %v858_v8 = vadd.f32 %v1750_v9, %v719_v36 }
  0xc9   : > { %v985_v45 = vmul.f32 %v857_v35, %v449_v33  ;;  %v859_v10 = vadd.f32 %v1754_v11, %v720_v37  ;;  %1108 = vst [vmem:[%s1793_s10 + $0x3c0] sm:$0xff] %v980_v38  ;;  %1109 = vst [vmem:[%s1793_s10 + $0x3c8] sm:$0xff] %v981_v39 }
  0xca   : > { %1110 = vst [vmem:[%s1793_s10 + $0x3d0] sm:$0xff] %v982_v40  ;;  %1111 = vst [vmem:[%s1793_s10 + $0x3d8] sm:$0xff] %v983_v41  ;;  %v986_v9 = vmul.f32 %v858_v8, %v450_v42 }
  0xcb   : > { %1112 = vst [vmem:[%s1793_s10 + $0x3e0] sm:$0xff] %v984_v44  ;;  %1113 = vst [vmem:[%s1793_s10 + $0x3e8] sm:$0xff] %v985_v45  ;;  %v987_v46 = vmul.f32 %v859_v10, %v451_v43 }
  0xcc   : > { %1114 = vst [vmem:[%s1793_s10 + $0x3f0] sm:$0xff] %v986_v9 }
  0xcd   : > { %1115 = vst [vmem:[%s1793_s10 + $0x3f8] sm:$0xff] %v987_v46 }
  0xce   : > { %1444 = shalt.err (!%p1441_p11)
}
  0xcf   : > { %s1445_s25 = scalar_lea.hbm %s2398_s21, 16384  ;;  %s1449_s24 = scalar_lea.hbm %s2457_s4, 32768 }
  0xd0   : > { %p1446_p1 = scmp.ne.s32.totalorder %s2398_s21, %s1445_s25  ;;  %p1450_p5 = scmp.lt.u32.totalorder %s2398_s21, %s2457_s4 }
  0xd1   : > { %p1451_p4 = scmp.lt.u32.totalorder %s1449_s24, %s1445_s25  ;;  %p1453_p0 = scmp.lt.u32.totalorder %s1445_s25, %s2398_s21 }
  0xd2   : > { %p1447_p6 = pnand %p1446_p1, %p2470_p3 }
  0xd3   : > { %p1452_p8 = por %p1451_p4, %p1450_p5 }
  0xd4   : > { %p1448_p2 = pneg %p1447_p6 }
  0xd5   : > { %p1454_p12 = por %p1453_p0, %p1452_p8 }
  0xd7   : > { %p1455_p13 = pnand %p1454_p12, %p1448_p2 }
  0xd9   : > { %1458 = shalt.err (!%p1455_p13)
}
  0xda   : > { %s1524_s6 = smov 256   ;;  %s1525_s18 = smov 16  }
  0xdb   : > { %1304 = dma.vmem_to_hbm [thread:$0]  (%p2470_p3), %s2400_s22, 16384, %s2398_s21, %s1117_s12, %s1524_s6, %s1524_s6, %s1525_s18  }
  0xdc PF: > { %s1148_s7 = sand.u32 1, %s1497_s15   ;;  %p2471_p7 = scmp.ne.s32.totalorder %s2464_s30, 0 }
  0xdd   : > { %p2472_p10 = scmp.ge.s32.totalorder %s1517_s20, 2  ;;  %s1149_s26 = scalar_lea.sflag [#allocation4], %s1148_s7 }
  0xdf   : > { %p1314_p9 = pnand %p2472_p10, %p2471_p7 }
  0xe1   : > { %1492 = dma.done.wait (!%p1314_p9), %s1149_s26, 16384  }
  0xe2   : > { %1494 = vsyncadd (!%p1314_p9), %s1149_s26, 4294950912  ;;  %s23_s20 = sadd.s32 1, %s1517_s20   ;;  %s2473_s15 = smov %s1501_s16 }
  0xe3   : > { %p20_p11 = scmp.ge.s32.totalorder %s23_s20, 4   ;;  %s2474_s16 = smov %s1505_s17 }
  0xe4   : > { %s2475_s17 = smov %s1607_s29  ;;  %s2476_s18 = smov %s1513_s19 }
  0xe5   : > { %s2477_s19 = smov %s2479_s23  ;;  %22 = sbr.rel (!%p20_p11) target bundleno = 8 (0x8), region = 100 }
  0xec   :  { %1154 = vsyncpa [#allocation3], 1 }
  0xed   :  { %1156 = vsyncpa [#allocation3 + $0x1], 1 }
  0xee   :  { %1157 = vsyncpa [#allocation6], 1 }
  0xef   :  { %1159 = vsyncpa [#allocation6 + $0x1], 1 }
  0xf0   :  { %1160 = vsyncpa [#allocation4], 1 }
  0xf1   :  { %1162 = vsyncpa [#allocation4 + $0x1], 1 }

</bundles_post_ra>
